<compile_context>
chip_gen: v5e
topology: v5e:2x2
jax: 0.10.0
libtpu: 0.0.40
codegen_flags: <defaults>
</compile_context>

<pallas_src>
import functools

import jax
import jax.numpy as jnp
from jax.experimental import pallas as pl
from jax.experimental.pallas import tpu as pltpu

EPS = 1e-5


def _round_up(a, m):
    return ((a + m - 1) // m) * m


# ----------------------------------------------------------------------------
# Kernel 1: fused conv1/bn/relu -> conv2/bn/relu -> conv3/bn[/relu] -> max over points.
# Grid = (B, N_padded // tile_n); the point axis is a reduction ("arbitrary") with a
# running (8, C3) max accumulator in VMEM scratch, finalized to (1, C3) on the last step.
# ----------------------------------------------------------------------------
def pointmlp_max_kernel(x_ref, w1_ref, b1_ref, w2_ref, b2_ref, w3_ref, b3_ref,
                        out_ref, acc_ref, *, final_relu, c3_chunk):
    nt = pl.program_id(1)

    @pl.when(nt == 0)
    def _():
        acc_ref[...] = jnp.full(acc_ref.shape, -jnp.inf, acc_ref.dtype)

    # layer 1 (input transform + BN scale already folded into w1_eff)
    x = x_ref[0].astype(jnp.bfloat16)                                 # (tile_n, Cin)
    h = jnp.dot(x, w1_ref[0], preferred_element_type=jnp.float32)
    h = jnp.maximum(h + b1_ref[...], 0.0)
    # layer 2
    h = jnp.dot(h.astype(jnp.bfloat16), w2_ref[...],
                preferred_element_type=jnp.float32)
    h = jnp.maximum(h + b2_ref[...], 0.0)
    h = h.astype(jnp.bfloat16)                                        # (tile_n, C2)

    tile_n = h.shape[0]
    c3 = acc_ref.shape[1]
    # layer 3: chunked over output columns to bound the f32 intermediate size
    for c in range(c3 // c3_chunk):
        lo = c * c3_chunk
        h3 = jnp.dot(h, w3_ref[:, lo:lo + c3_chunk],
                     preferred_element_type=jnp.float32)              # (tile_n, chunk)
        h3 = h3 + b3_ref[:, lo:lo + c3_chunk]
        if final_relu:
            h3 = jnp.maximum(h3, 0.0)
        # per-tile max done as VPU elementwise max across 8-row groups (no XLU per tile)
        part = jnp.max(h3.reshape(tile_n // 8, 8, c3_chunk), axis=0)  # (8, chunk)
        acc_ref[:, lo:lo + c3_chunk] = jnp.maximum(acc_ref[:, lo:lo + c3_chunk], part)

    @pl.when(nt == pl.num_programs(1) - 1)
    def _():
        # single cross-sublane 8 -> 1 reduce per batch element
        out_ref[0] = jnp.max(acc_ref[...], axis=0, keepdims=True)


def pointmlp_max(x, trans, layer_params, *, final_relu, tile_n=256, c3_chunk=256):
    """x: (B, N, Cin) f32; trans: (B, Cin, Cin) f32; returns (B, C3) f32 pooled feature."""
    B, N, cin = x.shape
    w1, b1, w2, b2, w3, b3 = layer_params     # weights bf16 (BN scale folded), biases f32
    c1, c2, c3 = w1.shape[1], w2.shape[1], w3.shape[1]
    assert tile_n % 8 == 0 and c3 % c3_chunk == 0 and c3_chunk % 128 == 0

    # Fold the input transform into the first-layer weight: (x @ T) @ W1 == x @ (T @ W1).
    w1_eff = jnp.einsum("bij,jk->bik", trans,
                        w1.astype(jnp.float32)).astype(jnp.bfloat16)  # (B, Cin, C1)

    # Clamp tile to the (8-rounded) point count and pad N by replicating points
    # (exact for max-pooling) so no trailing points are dropped.
    tile = min(tile_n, _round_up(N, 8))
    n_pad = _round_up(N, tile)
    if n_pad != N:
        idx = jnp.arange(n_pad) % N
        x = jnp.take(x, idx, axis=1)

    kernel = functools.partial(pointmlp_max_kernel, final_relu=final_relu,
                               c3_chunk=c3_chunk)
    out = pl.pallas_call(
        kernel,
        out_shape=jax.ShapeDtypeStruct((B, 1, c3), jnp.float32),
        grid_spec=pltpu.PrefetchScalarGridSpec(
            num_scalar_prefetch=0,
            grid=(B, n_pad // tile),
            in_specs=[
                pl.BlockSpec((1, tile, cin), lambda b, n: (b, n, 0)),
                pl.BlockSpec((1, cin, c1), lambda b, n: (b, 0, 0)),
                pl.BlockSpec((1, c1), lambda b, n: (0, 0)),
                pl.BlockSpec((c1, c2), lambda b, n: (0, 0)),
                pl.BlockSpec((1, c2), lambda b, n: (0, 0)),
                pl.BlockSpec((c2, c3), lambda b, n: (0, 0)),
                pl.BlockSpec((1, c3), lambda b, n: (0, 0)),
            ],
            out_specs=pl.BlockSpec((1, 1, c3), lambda b, n: (b, 0, 0)),
            scratch_shapes=[pltpu.VMEM((8, c3), jnp.float32)],
        ),
        compiler_params=pltpu.CompilerParams(
            dimension_semantics=("parallel", "arbitrary")),
    )(x, w1_eff, b1, w2, b2, w3, b3)
    return out.reshape(B, c3)


# ----------------------------------------------------------------------------
# Kernel 2: STN fully-connected head: fc1/bn/relu -> fc2/bn/relu -> fc3.
# Tiny (M = B); weights stored bf16 to halve DMA bytes; single invocation, whole arrays.
# ----------------------------------------------------------------------------
def fc_head_kernel(g_ref, w1_ref, b1_ref, w2_ref, b2_ref, w3_ref, b3_ref, out_ref):
    h = jnp.dot(g_ref[...].astype(jnp.bfloat16), w1_ref[...],
                preferred_element_type=jnp.float32)
    h = jnp.maximum(h + b1_ref[...], 0.0)
    h = jnp.dot(h.astype(jnp.bfloat16), w2_ref[...],
                preferred_element_type=jnp.float32)
    h = jnp.maximum(h + b2_ref[...], 0.0)
    out_ref[...] = jnp.dot(h.astype(jnp.bfloat16), w3_ref[...],
                           preferred_element_type=jnp.float32) + b3_ref[...]


def fc_head(g, params):
    w1, b1, w2, b2, w3, b3 = params
    B = g.shape[0]
    out_dim = w3.shape[1]
    vmem = pl.BlockSpec(memory_space=pltpu.MemorySpace.VMEM)
    return pl.pallas_call(
        fc_head_kernel,
        out_shape=jax.ShapeDtypeStruct((B, out_dim), jnp.float32),
        in_specs=[vmem] * 7,
        out_specs=vmem,
    )(g, w1, b1, w2, b2, w3, b3)


# ----------------------------------------------------------------------------
# Full PointNetEncoder forward (global_feat=True, feature_transform=False)
# ----------------------------------------------------------------------------
def pointnet_encoder(x_bnc, stn_conv, stn_fc, enc_conv, *, tile_n=256):
    B = x_bnc.shape[0]
    eye3 = jnp.broadcast_to(jnp.eye(3, dtype=jnp.float32), (B, 3, 3))
    # STN3d: shared-MLP + max-pool over points -> 1024-d global feature
    g_stn = pointmlp_max(x_bnc, eye3, stn_conv, final_relu=True, tile_n=tile_n)
    # STN3d: FC head -> 9 values, add identity, reshape to (B, 3, 3)
    t9 = fc_head(g_stn, stn_fc) + jnp.eye(3, dtype=jnp.float32).reshape(1, 9)
    trans = t9.reshape(B, 3, 3)
    # Encoder: input transform folded into conv1 weight, shared MLP, max-pool
    gfeat = pointmlp_max(x_bnc, trans, enc_conv, final_relu=False, tile_n=tile_n)
    # TODO(synk): feature_transform / semseg / global_feat=False branches not implemented.
    return gfeat, trans, None  # trans_feat is None (feature_transform=False)


# ----------------------------------------------------------------------------
# Deterministic parameter initialization (shapes from the PyTorch __init__).
# BN (eval mode) scale is folded into the weight, bias folded into a per-channel bias.
# Weights are stored in bf16 (MXU operands); biases stay f32 (VPU path).
# ----------------------------------------------------------------------------
def init_params(key):
    ks = iter(jax.random.split(key, 64))

    def nk():
        return next(ks)

    def conv_bn(cin, cout):
        w = 0.1 * jax.random.normal(nk(), (cin, cout), jnp.float32)
        b = 0.1 * jax.random.normal(nk(), (cout,), jnp.float32)
        gamma = jax.random.uniform(nk(), (cout,), jnp.float32, 0.5, 1.5)
        beta = 0.1 * jax.random.normal(nk(), (cout,), jnp.float32)
        mean = 0.1 * jax.random.normal(nk(), (cout,), jnp.float32)
        var = jax.random.uniform(nk(), (cout,), jnp.float32, 0.5, 1.5)
        scale = gamma / jnp.sqrt(var + EPS)
        w_f = (w * scale).astype(jnp.bfloat16)               # BN scale folded into weight
        bias = ((b - mean) * scale + beta).reshape(1, -1).astype(jnp.float32)
        return (w_f, bias)

    def linear(cin, cout):
        w = 0.1 * jax.random.normal(nk(), (cin, cout), jnp.float32)
        b = 0.1 * jax.random.normal(nk(), (cout,), jnp.float32)
        return (w.astype(jnp.bfloat16), b.reshape(1, cout).astype(jnp.float32))

    # STN3d: conv1(3->64)+bn1, conv2(64->128)+bn2, conv3(128->1024)+bn3
    stn_conv = conv_bn(3, 64) + conv_bn(64, 128) + conv_bn(128, 1024)
    # STN3d head: fc1(1024->512)+bn4, fc2(512->256)+bn5, fc3(256->9)
    stn_fc = conv_bn(1024, 512) + conv_bn(512, 256) + linear(256, 9)
    # Encoder: conv1(3->64)+bn1, conv2(64->128)+bn2, conv3(128->1024)+bn3
    enc_conv = conv_bn(3, 64) + conv_bn(64, 128) + conv_bn(128, 1024)
    return stn_conv, stn_fc, enc_conv


# ----------------------------------------------------------------------------
# Pure-JAX reference (same folded math, f32) for correctness checking
# ----------------------------------------------------------------------------
def _ref_mlp_max(x, trans, p, final_relu):
    w1, b1, w2, b2, w3, b3 = p
    h = jnp.einsum('bnc,bcd->bnd', x, trans)
    h = jnp.maximum(h @ w1.astype(jnp.float32) + b1, 0.0)
    h = jnp.maximum(h @ w2.astype(jnp.float32) + b2, 0.0)
    h = h @ w3.astype(jnp.float32) + b3
    if final_relu:
        h = jnp.maximum(h, 0.0)
    return jnp.max(h, axis=1)


def ref_forward(x_bnc, stn_conv, stn_fc, enc_conv):
    B = x_bnc.shape[0]
    eye3 = jnp.broadcast_to(jnp.eye(3, dtype=jnp.float32), (B, 3, 3))
    g = _ref_mlp_max(x_bnc, eye3, stn_conv, True)
    w1, b1, w2, b2, w3, b3 = stn_fc
    h = jnp.maximum(g @ w1.astype(jnp.float32) + b1, 0.0)
    h = jnp.maximum(h @ w2.astype(jnp.float32) + b2, 0.0)
    t9 = h @ w3.astype(jnp.float32) + b3 + jnp.eye(3, dtype=jnp.float32).reshape(1, 9)
    trans = t9.reshape(B, 3, 3)
    gfeat = _ref_mlp_max(x_bnc, trans, enc_conv, False)
    return gfeat, trans


if __name__ == "__main__":
    key = jax.random.PRNGKey(0)
    kx, kp = jax.random.split(key)

    B, N = 2, 300                       # small shapes; N deliberately not a tile multiple
    x_bcn = jax.random.normal(kx, (B, 3, N), jnp.float32)   # PyTorch layout (B, C, N)
    x_bnc = jnp.transpose(x_bcn, (0, 2, 1))                  # kernel layout (B, N, C)

    stn_conv, stn_fc, enc_conv = init_params(kp)

    gfeat, trans, trans_feat = pointnet_encoder(x_bnc, stn_conv, stn_fc, enc_conv,
                                                tile_n=128)
    jax.block_until_ready((gfeat, trans))

    g_ref, t_ref = ref_forward(x_bnc, stn_conv, stn_fc, enc_conv)
    assert gfeat.shape == (B, 1024) and trans.shape == (B, 3, 3) and trans_feat is None
    # bf16 matmul operands (f32 accumulation) => looser tolerance than a pure-f32 check
    assert jnp.allclose(trans, t_ref, rtol=3e-2, atol=3e-2), "trans mismatch"
    assert jnp.allclose(gfeat, g_ref, rtol=5e-2, atol=5e-2), "global feature mismatch"

    print("KERNEL_OK")
</pallas_src>

<mosaic_0001>
module attributes {stable_mosaic.version = 11 : i64} {
  func.func @pointmlp_max_kernel(%arg0: i32, %arg1: i32, %arg2: memref<1x128x3xf32, #tpu.memory_space<vmem>>, %arg3: memref<1x3x64xbf16, #tpu.memory_space<vmem>>, %arg4: memref<1x64xf32, #tpu.memory_space<vmem>>, %arg5: memref<64x128xbf16, #tpu.memory_space<vmem>>, %arg6: memref<1x128xf32, #tpu.memory_space<vmem>>, %arg7: memref<128x1024xbf16, #tpu.memory_space<vmem>>, %arg8: memref<1x1024xf32, #tpu.memory_space<vmem>>, %arg9: memref<1x1x1024xf32, #tpu.memory_space<vmem>>, %arg10: memref<8x1024xf32, #tpu.memory_space<vmem>>) attributes {dimension_semantics = [#tpu.dimension_semantics<parallel>, #tpu.dimension_semantics<arbitrary>], iteration_bounds = array<i64: 2, 3>, scalar_prefetch = 0 : i64, scratch_operands = 1 : i64, tpu.core_type = #tpu.core_type<tc>, window_params = [{transform_indices = @transform_0, window_bounds = array<i64: 1, 128, 3>}, {transform_indices = @transform_1, window_bounds = array<i64: 1, 3, 64>}, {pipeline_mode = #tpu.pipeline_mode<synchronous>, transform_indices = @transform_2, window_bounds = array<i64: 1, 64>}, {pipeline_mode = #tpu.pipeline_mode<synchronous>, transform_indices = @transform_3, window_bounds = array<i64: 64, 128>}, {pipeline_mode = #tpu.pipeline_mode<synchronous>, transform_indices = @transform_4, window_bounds = array<i64: 1, 128>}, {pipeline_mode = #tpu.pipeline_mode<synchronous>, transform_indices = @transform_5, window_bounds = array<i64: 128, 1024>}, {pipeline_mode = #tpu.pipeline_mode<synchronous>, transform_indices = @transform_6, window_bounds = array<i64: 1, 1024>}, {transform_indices = @transform_7, window_bounds = array<i64: 1, 1, 1024>}]} {
    %c0_i32 = arith.constant 0 : i32
    %0 = arith.cmpi eq, %arg1, %c0_i32 : i32
    %1 = arith.extui %0 : i1 to i32
    %c0_i32_0 = arith.constant 0 : i32
    %2 = arith.cmpi ne, %1, %c0_i32_0 : i32
    scf.if %2 {
      %cst_57 = arith.constant 0xFF800000 : f32
      %74 = vector.broadcast %cst_57 : f32 to vector<8x1024xf32>
      %c0_58 = arith.constant 0 : index
      %c0_59 = arith.constant 0 : index
      %75 = vector.load %arg10[%c0_58, %c0_59] : memref<8x1024xf32, #tpu.memory_space<vmem>>, vector<8x1024xf32>
      tpu.vector_store %arg10[%c0_58, %c0_59], %74 {strides = array<i32>} : memref<8x1024xf32, #tpu.memory_space<vmem>>, vector<8x1024xf32>,
    } else {
    }
    %c0 = arith.constant 0 : index
    %c0_1 = arith.constant 0 : index
    %c0_2 = arith.constant 0 : index
    %3 = vector.load %arg2[%c0, %c0_1, %c0_2] : memref<1x128x3xf32, #tpu.memory_space<vmem>>, vector<1x128x3xf32>
    %4 = vector.shape_cast %3 : vector<1x128x3xf32> to vector<128x3xf32>
    %5 = arith.truncf %4 : vector<128x3xf32> to vector<128x3xbf16>
    %c0_3 = arith.constant 0 : index
    %c0_4 = arith.constant 0 : index
    %c0_5 = arith.constant 0 : index
    %6 = vector.load %arg3[%c0_3, %c0_4, %c0_5] : memref<1x3x64xbf16, #tpu.memory_space<vmem>>, vector<1x3x64xbf16>
    %7 = vector.shape_cast %6 : vector<1x3x64xbf16> to vector<3x64xbf16>
    %cst = arith.constant dense<0.000000e+00> : vector<128x64xf32>
    %8 = tpu.matmul %5, %7, %cst {dimension_numbers = #tpu.dot_dimension_numbers<[1], [0], [0], [1], [0, 0, 1, 1], [], []>} : vector<128x3xbf16>, vector<3x64xbf16>, vector<128x64xf32> -> vector<128x64xf32>
    %c0_6 = arith.constant 0 : index
    %c0_7 = arith.constant 0 : index
    %9 = vector.load %arg4[%c0_6, %c0_7] : memref<1x64xf32, #tpu.memory_space<vmem>>, vector<1x64xf32>
    %10 = vector.broadcast %9 : vector<1x64xf32> to vector<128x64xf32>
    %11 = arith.addf %8, %10 : vector<128x64xf32>
    %cst_8 = arith.constant 0.000000e+00 : f32
    %12 = vector.broadcast %cst_8 : f32 to vector<128x64xf32>
    %13 = arith.maximumf %11, %12 : vector<128x64xf32>
    %14 = arith.truncf %13 : vector<128x64xf32> to vector<128x64xbf16>
    %c0_9 = arith.constant 0 : index
    %c0_10 = arith.constant 0 : index
    %15 = vector.load %arg5[%c0_9, %c0_10] : memref<64x128xbf16, #tpu.memory_space<vmem>>, vector<64x128xbf16>
    %cst_11 = arith.constant dense<0.000000e+00> : vector<128x128xf32>
    %16 = tpu.matmul %14, %15, %cst_11 {dimension_numbers = #tpu.dot_dimension_numbers<[1], [0], [0], [1], [0, 0, 1, 1], [], []>} : vector<128x64xbf16>, vector<64x128xbf16>, vector<128x128xf32> -> vector<128x128xf32>
    %c0_12 = arith.constant 0 : index
    %c0_13 = arith.constant 0 : index
    %17 = vector.load %arg6[%c0_12, %c0_13] : memref<1x128xf32, #tpu.memory_space<vmem>>, vector<1x128xf32>
    %18 = vector.broadcast %17 : vector<1x128xf32> to vector<128x128xf32>
    %19 = arith.addf %16, %18 : vector<128x128xf32>
    %cst_14 = arith.constant 0.000000e+00 : f32
    %20 = vector.broadcast %cst_14 : f32 to vector<128x128xf32>
    %21 = arith.maximumf %19, %20 : vector<128x128xf32>
    %22 = arith.truncf %21 : vector<128x128xf32> to vector<128x128xbf16>
    %c0_15 = arith.constant 0 : index
    %c0_16 = arith.constant 0 : index
    %23 = vector.load %arg7[%c0_15, %c0_16] : memref<128x1024xbf16, #tpu.memory_space<vmem>>, vector<128x256xbf16>
    %cst_17 = arith.constant dense<0.000000e+00> : vector<128x256xf32>
    %24 = tpu.matmul %22, %23, %cst_17 {dimension_numbers = #tpu.dot_dimension_numbers<[1], [0], [0], [1], [0, 0, 1, 1], [], []>} : vector<128x128xbf16>, vector<128x256xbf16>, vector<128x256xf32> -> vector<128x256xf32>
    %c0_18 = arith.constant 0 : index
    %c0_19 = arith.constant 0 : index
    %25 = vector.load %arg8[%c0_18, %c0_19] : memref<1x1024xf32, #tpu.memory_space<vmem>>, vector<1x256xf32>
    %26 = vector.broadcast %25 : vector<1x256xf32> to vector<128x256xf32>
    %27 = arith.addf %24, %26 : vector<128x256xf32>
    %cst_20 = arith.constant 0.000000e+00 : f32
    %28 = vector.broadcast %cst_20 : f32 to vector<128x256xf32>
    %29 = arith.maximumf %27, %28 : vector<128x256xf32>
    %30 = vector.shape_cast %29 : vector<128x256xf32> to vector<16x8x256xf32>
    %cst_21 = arith.constant dense<0xFF800000> : vector<8x256xf32>
    %31 = vector.multi_reduction <maximumf>, %30, %cst_21 [0] : vector<16x8x256xf32> to vector<8x256xf32>
    %c0_22 = arith.constant 0 : index
    %c0_23 = arith.constant 0 : index
    %32 = vector.load %arg10[%c0_22, %c0_23] : memref<8x1024xf32, #tpu.memory_space<vmem>>, vector<8x256xf32>
    %33 = arith.maximumf %32, %31 : vector<8x256xf32>
    %c0_24 = arith.constant 0 : index
    %c0_25 = arith.constant 0 : index
    %34 = vector.load %arg10[%c0_24, %c0_25] : memref<8x1024xf32, #tpu.memory_space<vmem>>, vector<8x256xf32>
    tpu.vector_store %arg10[%c0_24, %c0_25], %33 {strides = array<i32>} : memref<8x1024xf32, #tpu.memory_space<vmem>>, vector<8x256xf32>,
    %c0_26 = arith.constant 0 : index
    %c256 = arith.constant 256 : index
    %35 = vector.load %arg7[%c0_26, %c256] : memref<128x1024xbf16, #tpu.memory_space<vmem>>, vector<128x256xbf16>
    %cst_27 = arith.constant dense<0.000000e+00> : vector<128x256xf32>
    %36 = tpu.matmul %22, %35, %cst_27 {dimension_numbers = #tpu.dot_dimension_numbers<[1], [0], [0], [1], [0, 0, 1, 1], [], []>} : vector<128x128xbf16>, vector<128x256xbf16>, vector<128x256xf32> -> vector<128x256xf32>
    %c0_28 = arith.constant 0 : index
    %c256_29 = arith.constant 256 : index
    %37 = vector.load %arg8[%c0_28, %c256_29] : memref<1x1024xf32, #tpu.memory_space<vmem>>, vector<1x256xf32>
    %38 = vector.broadcast %37 : vector<1x256xf32> to vector<128x256xf32>
    %39 = arith.addf %36, %38 : vector<128x256xf32>
    %cst_30 = arith.constant 0.000000e+00 : f32
    %40 = vector.broadcast %cst_30 : f32 to vector<128x256xf32>
    %41 = arith.maximumf %39, %40 : vector<128x256xf32>
    %42 = vector.shape_cast %41 : vector<128x256xf32> to vector<16x8x256xf32>
    %cst_31 = arith.constant dense<0xFF800000> : vector<8x256xf32>
    %43 = vector.multi_reduction <maximumf>, %42, %cst_31 [0] : vector<16x8x256xf32> to vector<8x256xf32>
    %c0_32 = arith.constant 0 : index
    %c256_33 = arith.constant 256 : index
    %44 = vector.load %arg10[%c0_32, %c256_33] : memref<8x1024xf32, #tpu.memory_space<vmem>>, vector<8x256xf32>
    %45 = arith.maximumf %44, %43 : vector<8x256xf32>
    %c0_34 = arith.constant 0 : index
    %c256_35 = arith.constant 256 : index
    %46 = vector.load %arg10[%c0_34, %c256_35] : memref<8x1024xf32, #tpu.memory_space<vmem>>, vector<8x256xf32>
    tpu.vector_store %arg10[%c0_34, %c256_35], %45 {strides = array<i32>} : memref<8x1024xf32, #tpu.memory_space<vmem>>, vector<8x256xf32>,
    %c0_36 = arith.constant 0 : index
    %c512 = arith.constant 512 : index
    %47 = vector.load %arg7[%c0_36, %c512] : memref<128x1024xbf16, #tpu.memory_space<vmem>>, vector<128x256xbf16>
    %cst_37 = arith.constant dense<0.000000e+00> : vector<128x256xf32>
    %48 = tpu.matmul %22, %47, %cst_37 {dimension_numbers = #tpu.dot_dimension_numbers<[1], [0], [0], [1], [0, 0, 1, 1], [], []>} : vector<128x128xbf16>, vector<128x256xbf16>, vector<128x256xf32> -> vector<128x256xf32>
    %c0_38 = arith.constant 0 : index
    %c512_39 = arith.constant 512 : index
    %49 = vector.load %arg8[%c0_38, %c512_39] : memref<1x1024xf32, #tpu.memory_space<vmem>>, vector<1x256xf32>
    %50 = vector.broadcast %49 : vector<1x256xf32> to vector<128x256xf32>
    %51 = arith.addf %48, %50 : vector<128x256xf32>
    %cst_40 = arith.constant 0.000000e+00 : f32
    %52 = vector.broadcast %cst_40 : f32 to vector<128x256xf32>
    %53 = arith.maximumf %51, %52 : vector<128x256xf32>
    %54 = vector.shape_cast %53 : vector<128x256xf32> to vector<16x8x256xf32>
    %cst_41 = arith.constant dense<0xFF800000> : vector<8x256xf32>
    %55 = vector.multi_reduction <maximumf>, %54, %cst_41 [0] : vector<16x8x256xf32> to vector<8x256xf32>
    %c0_42 = arith.constant 0 : index
    %c512_43 = arith.constant 512 : index
    %56 = vector.load %arg10[%c0_42, %c512_43] : memref<8x1024xf32, #tpu.memory_space<vmem>>, vector<8x256xf32>
    %57 = arith.maximumf %56, %55 : vector<8x256xf32>
    %c0_44 = arith.constant 0 : index
    %c512_45 = arith.constant 512 : index
    %58 = vector.load %arg10[%c0_44, %c512_45] : memref<8x1024xf32, #tpu.memory_space<vmem>>, vector<8x256xf32>
    tpu.vector_store %arg10[%c0_44, %c512_45], %57 {strides = array<i32>} : memref<8x1024xf32, #tpu.memory_space<vmem>>, vector<8x256xf32>,
    %c0_46 = arith.constant 0 : index
    %c768 = arith.constant 768 : index
    %59 = vector.load %arg7[%c0_46, %c768] : memref<128x1024xbf16, #tpu.memory_space<vmem>>, vector<128x256xbf16>
    %cst_47 = arith.constant dense<0.000000e+00> : vector<128x256xf32>
    %60 = tpu.matmul %22, %59, %cst_47 {dimension_numbers = #tpu.dot_dimension_numbers<[1], [0], [0], [1], [0, 0, 1, 1], [], []>} : vector<128x128xbf16>, vector<128x256xbf16>, vector<128x256xf32> -> vector<128x256xf32>
    %c0_48 = arith.constant 0 : index
    %c768_49 = arith.constant 768 : index
    %61 = vector.load %arg8[%c0_48, %c768_49] : memref<1x1024xf32, #tpu.memory_space<vmem>>, vector<1x256xf32>
    %62 = vector.broadcast %61 : vector<1x256xf32> to vector<128x256xf32>
    %63 = arith.addf %60, %62 : vector<128x256xf32>
    %cst_50 = arith.constant 0.000000e+00 : f32
    %64 = vector.broadcast %cst_50 : f32 to vector<128x256xf32>
    %65 = arith.maximumf %63, %64 : vector<128x256xf32>
    %66 = vector.shape_cast %65 : vector<128x256xf32> to vector<16x8x256xf32>
    %cst_51 = arith.constant dense<0xFF800000> : vector<8x256xf32>
    %67 = vector.multi_reduction <maximumf>, %66, %cst_51 [0] : vector<16x8x256xf32> to vector<8x256xf32>
    %c0_52 = arith.constant 0 : index
    %c768_53 = arith.constant 768 : index
    %68 = vector.load %arg10[%c0_52, %c768_53] : memref<8x1024xf32, #tpu.memory_space<vmem>>, vector<8x256xf32>
    %69 = arith.maximumf %68, %67 : vector<8x256xf32>
    %c0_54 = arith.constant 0 : index
    %c768_55 = arith.constant 768 : index
    %70 = vector.load %arg10[%c0_54, %c768_55] : memref<8x1024xf32, #tpu.memory_space<vmem>>, vector<8x256xf32>
    tpu.vector_store %arg10[%c0_54, %c768_55], %69 {strides = array<i32>} : memref<8x1024xf32, #tpu.memory_space<vmem>>, vector<8x256xf32>,
    %c2_i32 = arith.constant 2 : i32
    %71 = arith.cmpi eq, %arg1, %c2_i32 : i32
    %72 = arith.extui %71 : i1 to i32
    %c0_i32_56 = arith.constant 0 : i32
    %73 = arith.cmpi ne, %72, %c0_i32_56 : i32
    scf.if %73 {
      %c0_57 = arith.constant 0 : index
      %c0_58 = arith.constant 0 : index
      %74 = vector.load %arg10[%c0_57, %c0_58] : memref<8x1024xf32, #tpu.memory_space<vmem>>, vector<8x1024xf32>
      %cst_59 = arith.constant dense<0xFF800000> : vector<1024xf32>
      %75 = vector.multi_reduction <maximumf>, %74, %cst_59 [0] : vector<8x1024xf32> to vector<1024xf32>
      %76 = vector.shape_cast %75 : vector<1024xf32> to vector<1x1024xf32>
      %c0_60 = arith.constant 0 : index
      %c0_61 = arith.constant 0 : index
      %c0_62 = arith.constant 0 : index
      %77 = vector.load %arg9[%c0_60, %c0_61, %c0_62] : memref<1x1x1024xf32, #tpu.memory_space<vmem>>, vector<1x1x1024xf32>
      %78 = vector.shape_cast %77 : vector<1x1x1024xf32> to vector<1x1024xf32>
      %79 = vector.shape_cast %76 : vector<1x1024xf32> to vector<1x1x1024xf32>
      tpu.vector_store %arg9[%c0_60, %c0_61, %c0_62], %79 {strides = array<i32>} : memref<1x1x1024xf32, #tpu.memory_space<vmem>>, vector<1x1x1024xf32>,
    } else {
    }
    return
  }
  func.func @transform_0(%arg0: i32, %arg1: i32) -> (i32, i32, i32) {
    %c0_i32 = arith.constant 0 : i32
    %c0_i32_0 = arith.constant 0 : i32
    return %arg0, %arg1, %c0_i32 : i32, i32, i32
  }
  func.func @transform_1(%arg0: i32, %arg1: i32) -> (i32, i32, i32) {
    %c0_i32 = arith.constant 0 : i32
    %c0_i32_0 = arith.constant 0 : i32
    %c0_i32_1 = arith.constant 0 : i32
    return %arg0, %c0_i32, %c0_i32_0 : i32, i32, i32
  }
  func.func @transform_2(%arg0: i32, %arg1: i32) -> (i32, i32) {
    %c0_i32 = arith.constant 0 : i32
    %c0_i32_0 = arith.constant 0 : i32
    %c0_i32_1 = arith.constant 0 : i32
    return %c0_i32, %c0_i32_0 : i32, i32
  }
  func.func @transform_3(%arg0: i32, %arg1: i32) -> (i32, i32) {
    %c0_i32 = arith.constant 0 : i32
    %c0_i32_0 = arith.constant 0 : i32
    %c0_i32_1 = arith.constant 0 : i32
    return %c0_i32, %c0_i32_0 : i32, i32
  }
  func.func @transform_4(%arg0: i32, %arg1: i32) -> (i32, i32) {
    %c0_i32 = arith.constant 0 : i32
    %c0_i32_0 = arith.constant 0 : i32
    %c0_i32_1 = arith.constant 0 : i32
    return %c0_i32, %c0_i32_0 : i32, i32
  }
  func.func @transform_5(%arg0: i32, %arg1: i32) -> (i32, i32) {
    %c0_i32 = arith.constant 0 : i32
    %c0_i32_0 = arith.constant 0 : i32
    %c0_i32_1 = arith.constant 0 : i32
    return %c0_i32, %c0_i32_0 : i32, i32
  }
  func.func @transform_6(%arg0: i32, %arg1: i32) -> (i32, i32) {
    %c0_i32 = arith.constant 0 : i32
    %c0_i32_0 = arith.constant 0 : i32
    %c0_i32_1 = arith.constant 0 : i32
    return %c0_i32, %c0_i32_0 : i32, i32
  }
  func.func @transform_7(%arg0: i32, %arg1: i32) -> (i32, i32, i32) {
    %c0_i32 = arith.constant 0 : i32
    %c0_i32_0 = arith.constant 0 : i32
    %c0_i32_1 = arith.constant 0 : i32
    return %arg0, %c0_i32, %c0_i32_0 : i32, i32, i32
  }
}

</mosaic_0001>

<bundles_post_ra>
// kernel: tpu_custom_call.1
= control target key start
LH: loop header
LB: loop body
LE: loop exit
PB: predicated region body
PF: predicated region fallthrough
CT: control target
= control target key end

     0   :  { %12 = vsyncpa [#allocation4], 0  ;;  %s3402_s0 = inlined_call_operand.vmem [shape: f32[2,384,3], index: 0, kind: input, shape index: {}]   ;;  %s3403_s1 = inlined_call_operand.vmem [shape: bf16[2,3,64], index: 1, kind: input, shape index: {}]   ;;  %s3404_s2 = inlined_call_operand.vmem [shape: f32[1,64], index: 2, kind: input, shape index: {}]   ;;  %s3405_s3 = inlined_call_operand.vmem [shape: bf16[64,128], index: 3, kind: input, shape index: {}]   ;;  %s3406_s4 = inlined_call_operand.vmem [shape: f32[1,128], index: 4, kind: input, shape index: {}]   ;;  %s3407_s5 = inlined_call_operand.vmem [shape: bf16[128,1024], index: 5, kind: input, shape index: {}]   ;;  %s3408_s6 = inlined_call_operand.vmem [shape: f32[1,1024], index: 6, kind: input, shape index: {}]   ;;  %s3409_s7 = inlined_call_operand.hbm [shape: f32[2,1,1024], index: 7, kind: output, shape index: {}]  }
   0x1   :  { %14 = vsyncpa [#allocation4 + $0x1], 0  ;;  %s2466_s24 = smov 0   ;;  %s2468_s25 = smov 0  }
   0x2   :  { %s2470_s26 = smov 0   ;;  %s2472_s27 = smov 0  }
   0x3   :  { %s2474_s28 = smov 0   ;;  %s2476_s29 = smov 0  }
   0x4   :  { %s2478_s30 = smov 0   ;;  %s2480_s8 = smov 0  }
   0x5 LB: > { %3414 = sst [smem:[#allocation6_spill]] %s2414_s29  ;;  %s1868_s9 = sadd.s32 4294967295, %s2422_s8   ;;  %s2422_s8 = sphi %s2480_s8, %s20_s8   ;;  %s2418_s30 = sphi %s2478_s30, %s3424_s30   ;;  %s2414_s29 = sphi %s2476_s29, %s3423_s29   ;;  %s2410_s28 = sphi %s2474_s28, %s3422_s28   ;;  %s2406_s27 = sphi %s2472_s27, %s3421_s27   ;;  %s2402_s26 = sphi %s2470_s26, %s3427_s26   ;;  %s2398_s25 = sphi %s2468_s25, %s3426_s25   ;;  %s2394_s24 = sphi %s2466_s24, %s3425_s24  }
   0x6   : > { %3415 = sst [smem:[#allocation7_spill]] %s2418_s30  ;;  %s1869_s10 = sadd.s32 4294967294, %s2422_s8  }
   0x7   : > { %s29_s11 = sadd.s32 1, %s2414_s29  ;;  %s32_s12 = sadd.s32 1, %s2418_s30 }
   0x8   : > { %p30_p0 = scmp.ge.s32.totalorder %s29_s11, 3  ;;  %p208_p1 = scmp.ne.s32.totalorder %s2402_s26, %s2398_s25 }
   0x9   : > { %p209_p2 = scmp.eq.s32.totalorder %s1868_s9, 5  ;;  %p214_p4 = scmp.ne.s32.totalorder %s2398_s25, %s2394_s24 }
   0xa   : > { %s3429_s11 = smov (%p30_p0, %s29_s11), 0  ;;  %s3431_s12 = smov (!%p30_p0, %s32_s12), %s2418_s30 }
   0xb   : > { %3416 = sst [smem:[#allocation8_spill]] %s3429_s11  ;;  %p2515_p3 = por %p209_p2, %p208_p1 }
   0xc   : > { %p34_p5 = scmp.ge.s32.totalorder %s3431_s12, 2  ;;  %p215_p6 = scmp.eq.s32.totalorder %s1869_s10, 5 }
   0xd   : > { %p1872_p7 = scmp.ge.s32.totalorder %s2422_s8, 1  ;;  %p268_p8 = scmp.lt.s32.totalorder %s2422_s8, 7 }
   0xe   : > { %s3433_s12 = smov (%p34_p5, %s3431_s12), 0  ;;  %p2525_p9 = por %p215_p6, %p214_p4 }
   0xf   : > { %3418 = sst [smem:[#allocation9_spill]] %s3433_s12  ;;  %p269_p10 = pnand %p1872_p7, %p268_p8 }
  0x10   : > { %s195_s15 = ssub.s32 %s2418_s30, %s3433_s12  ;;  %s198_s16 = sadd.s32 1, %s2402_s26 }
  0x11   : > { %p196_p11 = scmp.eq.s32.totalorder %s195_s15, 0  ;;  %272 = sbr.rel (%p269_p10) target bundleno = 774 (0x306), region = 48 }
  0x12   : > { %s3413_s18 = sand.u32 (!%p269_p10), 1, %s2398_s25   ;;  %s1874_s19 = sshll.u32 (!%p269_p10), %s2406_s27, 4 }
  0x13   : > { %s2533_s17 = scalar_select %p196_p11, %s2402_s26, %s198_s16  }
  0x14   : > { %s2539_s20 = sshll.u32 (!%p269_p10), %s3413_s18, 3  ;;  %p309_p12 = scmp.lt.s32.totalorder (!%p269_p10), %s2410_s28, 1 }
  0x15   : > { %p311_p13 = scmp.lt.s32.totalorder (!%p269_p10), %s1874_s19, 47  ;;  %s307_s18 = scalar_lea.vmem (!%p269_p10), [#allocation3], %s2539_s20 }
  0x16   : > { %s310_s21 = scalar_select %p309_p12, %s2410_s28, 1 }
  0x17   : > { %s3435_s19 = smov (!%p311_p13, %s1874_s19), 47  ;;  %p1877_p0 = scmp.ne.s32.totalorder %s2406_s27, 0 }
  0x18   : > { %s2252_s22 = smul.u32 48, %s310_s21  ;;  %s1876_s23 = sshll.u32 %s310_s21, 1 }
  0x19   : > { %s321_s15 = scalar_lea.vmem %s3403_s1, %s1876_s23  ;;  %326 = sbr.rel (%p1877_p0) target bundleno = 39 (0x27), region = 52 }
  0x1a   : > { %s314_s16 = sadd.s32 %s2252_s22, %s3435_s19 }
  0x1b   : > { %s1875_s12 = sshll.u32 %s314_s16, 3 }
  0x1c   : > { %s2549_s29 = scalar_lea.vmem %s3402_s0, %s1875_s12 }
  0x1e   : > { %v2424_v0 = vmov -inf  }
  0x1f   : > { %327 = vst [vmem:[#allocation2 + $0x30] sm:$0xff] %v2424_v0 }
  0x20   : > { %328 = vst [vmem:[#allocation2] sm:$0xff] %v2424_v0 }
  0x21   : > { %329 = vst [vmem:[#allocation2 + $0x18] sm:$0xff] %v2424_v0 }
  0x22   : > { %330 = vst [vmem:[#allocation2 + $0x10] sm:$0xff] %v2424_v0 }
  0x23   : > { %331 = vst [vmem:[#allocation2 + $0x8] sm:$0xff] %v2424_v0 }
  0x24   : > { %332 = vst [vmem:[#allocation2 + $0x20] sm:$0xff] %v2424_v0 }
  0x25   : > { %333 = vst [vmem:[#allocation2 + $0x28] sm:$0xff] %v2424_v0 }
  0x26   : > { %334 = vst [vmem:[#allocation2 + $0x38] sm:$0xff] %v2424_v0 }
  0x27 PF: > { %v359_v1 = vld [vmem:[%s321_s15] sm:$0x3]  ;;  %vm389_vm0 = vcmask 1040384   ;;  %vm390_vm1 = vcmask 1041408   ;;  %v2425_v2 = vmov 65535   ;;  %v336_v5 = vld [vmem:[%s2549_s29 + $0x8] sm:$0xff] }
  0x28   : > { %v391_v3 = vsel %vm389_vm0, 4294967295, %v2425_v2  ;;  %v335_v4 = vld [vmem:[%s2549_s29] sm:$0xff]  ;;  %vm364_vm2 = vcmask 23552   ;;  %v337_v9 = vld [vmem:[%s2549_s29 + $0x10] sm:$0xff]  ;;  %v338_v10 = vld [vmem:[%s2549_s29 + $0x18] sm:$0xff]  ;;  %vm505_vm3 = vcmask 523264  }
  0x29   : > { %v392_v6 = vsel %vm390_vm1, %v391_v3, 0  ;;  %v351_v8 = vpack.c.bf16 %v336_v5, %v335_v4  ;;  %v352_v11 = vpack.c.bf16 %v338_v10, %v337_v9  ;;  %v345_v12 = vld [vmem:[%s2549_s29 + $0x50] sm:$0xff]  ;;  %v346_v13 = vld [vmem:[%s2549_s29 + $0x58] sm:$0xff]  ;;  %v339_v15 = vld [vmem:[%s2549_s29 + $0x20] sm:$0xff]  ;;  %p2166_p1 = scmp.ne.s32.totalorder %s2406_s27, 2 }
  0x2a   : > { %v394_v7 = vand.u32 %v392_v6, %v359_v1  ;;  %v356_v14 = vpack.c.bf16 %v346_v13, %v345_v12  ;;  %v340_v16 = vld [vmem:[%s2549_s29 + $0x28] sm:$0xff]  ;;  %v347_v18 = vld [vmem:[%s2549_s29 + $0x60] sm:$0xff]  ;;  %v341_v21 = vld [vmem:[%s2549_s29 + $0x30] sm:$0xff] }
  0x2b   : > { %v353_v17 = vpack.c.bf16 %v340_v16, %v339_v15  ;;  %v348_v19 = vld [vmem:[%s2549_s29 + $0x68] sm:$0xff]  ;;  %v342_v22 = vld [vmem:[%s2549_s29 + $0x38] sm:$0xff]  ;;  %v349_v24 = vld [vmem:[%s2549_s29 + $0x70] sm:$0xff] }
  0x2c   : > { %403 = vmatpush.bf16.msra.mxu0 %v394_v7  ;;  %2239 = vmatpush.bf16.msra.mxu3 %v394_v7  ;;  %v357_v20 = vpack.c.bf16 %v348_v19, %v347_v18  ;;  %v354_v23 = vpack.c.bf16 %v342_v22, %v341_v21  ;;  %v350_v25 = vld [vmem:[%s2549_s29 + $0x78] sm:$0xff]  ;;  %v343_v27 = vld [vmem:[%s2549_s29 + $0x40] sm:$0xff]  ;;  %v344_v28 = vld [vmem:[%s2549_s29 + $0x48] sm:$0xff] }
  0x2d   : > { %v358_v26 = vpack.c.bf16 %v350_v25, %v349_v24  ;;  %v355_v29 = vpack.c.bf16 %v344_v28, %v343_v27  ;;  %v2174_v30 = vld [vmem:[%s3405_s3 + $0x18] sm:$0xff]  ;;  %v2173_v31 = vld [vmem:[%s3405_s3 + $0x10] sm:$0xff]  ;;  %v2172_v32 = vld [vmem:[%s3405_s3 + $0x8] sm:$0xff] }
  0x2e   : > { %534 = vmatpush.bf16.msra.mxu1 %v2174_v30  ;;  %2240 = vmatpush.bf16.msra.mxu2 %v2174_v30  ;;  %v2171_v33 = vld [vmem:[%s3405_s3] sm:$0xff]  ;;  %v2032_v1 = vld [vmem:[%s3407_s5 + $0x1c8] sm:$0xf]  ;;  %v2205_v10 = vld [vmem:[%s3407_s5 + $0x1cc] sm:$0xf] }
  0x2f   : > { %1878 = vmatmul.msk.bf16.vlgmr.msra.gmra.mxu0 %vm364_vm2, %v351_v8  ;;  %1883 = vmatmul.msk.bf16.vlgmr.msra.gmra.mxu3 %vm364_vm2, %v356_v14  ;;  %v2594_v35 = vld [vmem:[%s3404_s2] ss:$0 sm:$0xff]  ;;  %v2206_v2 = vld [vmem:[%s3407_s5 + $0x1e4] sm:$0xf0]  ;;  %v2189_v3 = vld [vmem:[%s3407_s5 + $0x1c4] sm:$0xf] }
  0x30   : > { %v2033_v5 = vor.u32 %v2206_v2, %v2032_v1  ;;  %v1970_v6 = vld [vmem:[%s3407_s5 + $0x1e0] sm:$0xf0]  ;;  %v2024_v7 = vld [vmem:[%s3407_s5 + $0x188] sm:$0xf]  ;;  %v2203_v24 = vld [vmem:[%s3407_s5 + $0x18c] sm:$0xf] }
  0x31   : > { %v2204_v8 = vld [vmem:[%s3407_s5 + $0x1a4] sm:$0xf0]  ;;  %v1973_v9 = vor.u32 %v2189_v3, %v1970_v6  ;;  %v2187_v12 = vld [vmem:[%s3407_s5 + $0x184] sm:$0xf]  ;;  %v2026_v25 = vld [vmem:[%s3407_s5 + $0x1a8] sm:$0xf0] }
  0x32   : > { %535 = vmatpush.bf16.msra.mxu1 %v2173_v31  ;;  %2241 = vmatpush.bf16.msra.mxu2 %v2173_v31  ;;  %v2025_v15 = vor.u32 %v2204_v8, %v2024_v7  ;;  %v2016_v18 = vld [vmem:[%s3407_s5 + $0x148] sm:$0xf]  ;;  %v2185_v22 = vld [vmem:[%s3407_s5 + $0x144] sm:$0xf]  ;;  %v2029_v28 = vor.u32 %v2203_v24, %v2026_v25  ;;  %v2184_v1 = vld [vmem:[%s3407_s5 + $0x11c] sm:$0xf0] }
  0x33   : > { %973 = vmatpush.bf16.msrb.mxu0 %v2033_v5  ;;  %754 = vmatpush.bf16.msrb.mxu3 %v1973_v9  ;;  %v2202_v21 = vld [vmem:[%s3407_s5 + $0x164] sm:$0xf0]  ;;  %v2179_v7 = vld [vmem:[%s3407_s5 + $0x84] sm:$0xf]  ;;  %v2002_v24 = vld [vmem:[%s3407_s5 + $0xe8] sm:$0xf0] }
  0x34   : > { %v2017_v30 = vor.u32 %v2202_v21, %v2016_v18  ;;  %v1930_v8 = vld [vmem:[%s3407_s5 + $0xa0] sm:$0xf0]  ;;  %v1936_v21 = vld [vmem:[%s3407_s5 + $0xc0] sm:$0xf] }
  0x36   : > { %536 = vmatpush.bf16.msra.mxu1 %v2172_v32  ;;  %2242 = vmatpush.bf16.msra.mxu2 %v2172_v32  ;;  %v2183_v32 = vld [vmem:[%s3407_s5 + $0x104] sm:$0xf] }
  0x37   : > { %974 = vmatpush.bf16.msrb.mxu0 %v2025_v15 }
  0x3a   : > { %537 = vmatpush.bf16.msra.mxu1 %v2171_v33  ;;  %2243 = vmatpush.bf16.msra.mxu2 %v2171_v33  ;;  %v2008_v33 = vld [vmem:[%s3407_s5 + $0x108] sm:$0xf] }
  0x3b   : > { %975 = vmatpush.bf16.msrb.mxu0 %v2017_v30  ;;  %v2196_v30 = vld [vmem:[%s3407_s5 + $0xa4] sm:$0xf0] }
  0x3f   : > { %1879 = vmatmul.msk.bf16.gmra.mxu0 %vm364_vm2, %v352_v11  ;;  %1884 = vmatmul.msk.bf16.gmra.mxu3 %vm364_vm2, %v357_v20  ;;  %v2034_v11 = vld [vmem:[%s3407_s5 + $0x1e8] sm:$0xf0] }
  0x40   : > { %v2037_v16 = vor.u32 %v2205_v10, %v2034_v11 }
  0x42   : > { %1022 = vmatpush.bf16.msrb.mxu1 %v2037_v16 }
  0x46   : > { %1023 = vmatpush.bf16.msrb.mxu1 %v2029_v28  ;;  %v1992_v28 = vld [vmem:[%s3407_s5 + $0x88] sm:$0xf] }
  0x4f   : > { %1880 = vmatmul.msk.bf16.gmra.mxu0 %vm364_vm2, %v353_v17  ;;  %1885 = vmatmul.msk.bf16.gmra.mxu3 %vm364_vm2, %v358_v26  ;;  %v1962_v17 = vld [vmem:[%s3407_s5 + $0x1a0] sm:$0xf0]  ;;  %v1968_v26 = vld [vmem:[%s3407_s5 + $0x1c0] sm:$0xf] }
  0x50   : > { %v1965_v20 = vor.u32 %v2187_v12, %v1962_v17  ;;  %v1933_v12 = vor.u32 %v2179_v7, %v1930_v8  ;;  %v2160_v7 = vld [vmem:[%s3407_s5 + $0x1d8] sm:$0xf] }
  0x51   : > { %v2238_v8 = vld [vmem:[%s3407_s5 + $0x1f4] sm:$0xf0] }
  0x52   : > { %755 = vmatpush.bf16.msrb.mxu3 %v1965_v20 }
  0x5f   : > { %1881 = vmatmul.msk.bf16.gmra.mxu0 %vm364_vm2, %v354_v23  ;;  %v1954_v23 = vld [vmem:[%s3407_s5 + $0x160] sm:$0xf0] }
  0x6f   : > { %1882 = vmatmul.msk.bf16.gmra.mxu0 %vm364_vm2, %v355_v29  ;;  %v2190_v29 = vld [vmem:[%s3407_s5 + $0x1dc] sm:$0xf0] }
  0x70   : > { %v1969_v31 = vor.u32 %v2190_v29, %v1968_v26  ;;  %v1928_v26 = vld [vmem:[%s3407_s5 + $0x80] sm:$0xf] }
  0x72   : > { %705 = vmatpush.bf16.msrb.mxu2 %v1969_v31  ;;  %v2195_v31 = vld [vmem:[%s3407_s5 + $0x8c] sm:$0xf] }
  0xac   : > { %v405_v34 = vpop.f32.mrf.mxu0 }
  0xad   : > { %v406_v36 = vadd.f32 %v2594_v35, %v405_v34 }
  0xaf   : > { %v445_v39 = vmax.f32 %v406_v36, 0.0 }
  0xb2   : > { %v430_v46 = vpop.f32.mrf.mxu3 }
  0xb3   : > { %v431_v50 = vadd.f32 %v2594_v35, %v430_v46 }
  0xb4   : > { %v407_v37 = vpop.f32.mrf.mxu0 }
  0xb5   : > { %v408_v38 = vadd.f32 %v2594_v35, %v407_v37  ;;  %v455_v53 = vmax.f32 %v431_v50, 0.0  ;;  %v1957_v37 = vor.u32 %v2185_v22, %v1954_v23  ;;  %v2182_v22 = vld [vmem:[%s3407_s5 + $0xdc] sm:$0xf0]  ;;  %v2197_v23 = vld [vmem:[%s3407_s5 + $0xcc] sm:$0xf] }
  0xb6   : > { %v2005_v25 = vor.u32 %v2197_v23, %v2002_v24  ;;  %v2237_v23 = vld [vmem:[%s3407_s5 + $0x1dc] sm:$0xf] }
  0xb7   : > { %v446_v40 = vmax.f32 %v408_v38, 0.0  ;;  %v2200_v38 = vld [vmem:[%s3407_s5 + $0x124] sm:$0xf0]  ;;  %756 = vmatpush.bf16.msrb.mxu3 %v1957_v37 }
  0xb9   : > { %v461_v41 = vpack.c.bf16 %v446_v40, %v445_v39  ;;  %v1960_v39 = vld [vmem:[%s3407_s5 + $0x180] sm:$0xf] }
  0xba   : > { %v432_v52 = vpop.f32.mrf.mxu3  ;;  %v2188_v40 = vld [vmem:[%s3407_s5 + $0x19c] sm:$0xf0] }
  0xbb   : > { %1902 = vmatmul.msk.bf16.vlgmr.msra.gmra.mxu1 %vm505_vm3, %v461_v41  ;;  %v433_v54 = vadd.f32 %v2594_v35, %v432_v52  ;;  %v2199_v52 = vld [vmem:[%s3407_s5 + $0x10c] sm:$0xf] }
  0xbc   : > { %v410_v42 = vpop.f32.mrf.mxu0 }
  0xbd   : > { %v411_v43 = vadd.f32 %v2594_v35, %v410_v42  ;;  %v456_v55 = vmax.f32 %v433_v54, 0.0  ;;  %v1946_v42 = vld [vmem:[%s3407_s5 + $0x120] sm:$0xf0] }
  0xbf   : > { %v447_v47 = vmax.f32 %v411_v43, 0.0  ;;  %v466_v57 = vpack.c.bf16 %v456_v55, %v455_v53  ;;  %v1961_v43 = vor.u32 %v2188_v40, %v1960_v39  ;;  %v2010_v53 = vld [vmem:[%s3407_s5 + $0x128] sm:$0xf0]  ;;  %v1920_v39 = vld [vmem:[%s3407_s5 + $0x40] sm:$0xf] }
  0xc0   : > { %v2178_v40 = vld [vmem:[%s3407_s5 + $0x5c] sm:$0xf0] }
  0xc1   : > { %1907 = vmatmul.msk.bf16.vlgmr.msra.gmra.mxu2 %vm505_vm3, %v466_v57  ;;  %v2181_v57 = vld [vmem:[%s3407_s5 + $0xc4] sm:$0xf] }
  0xc2   : > { %v435_v60 = vpop.f32.mrf.mxu3  ;;  %706 = vmatpush.bf16.msrb.mxu2 %v1961_v43  ;;  %v2194_v43 = vld [vmem:[%s3407_s5 + $0x64] sm:$0xf0] }
  0xc3   : > { %v436_v0 = vadd.f32 %v2594_v35, %v435_v60  ;;  %v2013_v60 = vor.u32 %v2199_v52, %v2010_v53  ;;  %v2176_v52 = vld [vmem:[%s3407_s5 + $0x1c] sm:$0xf0]  ;;  %v1976_v53 = vld [vmem:[%s3407_s5 + $0x8] sm:$0xf] }
  0xc4   : > { %v412_v44 = vpop.f32.mrf.mxu0 }
  0xc5   : > { %v413_v45 = vadd.f32 %v2594_v35, %v412_v44  ;;  %v457_v13 = vmax.f32 %v436_v0, 0.0  ;;  %v2201_v44 = vld [vmem:[%s3407_s5 + $0x14c] sm:$0xf]  ;;  %v1944_v0 = vld [vmem:[%s3407_s5 + $0x100] sm:$0xf] }
  0xc6   : > { %v1945_v6 = vor.u32 %v2184_v1, %v1944_v0  ;;  %v2096_v0 = vld [vmem:[%s3407_s5 + $0x1d0] sm:$0xf] }
  0xc7   : > { %v448_v48 = vmax.f32 %v413_v45, 0.0  ;;  %v2018_v45 = vld [vmem:[%s3407_s5 + $0x168] sm:$0xf0]  ;;  %v2222_v1 = vld [vmem:[%s3407_s5 + $0x1ec] sm:$0xf0] }
  0xc9   : > { %v462_v49 = vpack.c.bf16 %v448_v48, %v447_v47  ;;  %v2021_v47 = vor.u32 %v2201_v44, %v2018_v45  ;;  %v1952_v48 = vld [vmem:[%s3407_s5 + $0x140] sm:$0xf]  ;;  %v2193_v44 = vld [vmem:[%s3407_s5 + $0x4c] sm:$0xf] }
  0xca   : > { %v437_v14 = vpop.f32.mrf.mxu3  ;;  %v1986_v45 = vld [vmem:[%s3407_s5 + $0x68] sm:$0xf0] }
  0xcb   : > { %1903 = vmatmul.msk.bf16.gmra.mxu1 %vm505_vm3, %v462_v49  ;;  %v438_v19 = vadd.f32 %v2594_v35, %v437_v14  ;;  %v2186_v49 = vld [vmem:[%s3407_s5 + $0x15c] sm:$0xf0] }
  0xcc   : > { %v415_v51 = vpop.f32.mrf.mxu0  ;;  %1024 = vmatpush.bf16.msrb.mxu1 %v2021_v47  ;;  %v1989_v47 = vor.u32 %v2193_v44, %v1986_v45  ;;  %v2144_v45 = vld [vmem:[%s3407_s5 + $0x158] sm:$0xf] }
  0xcd   : > { %v416_v56 = vadd.f32 %v2594_v35, %v415_v51  ;;  %v458_v27 = vmax.f32 %v438_v19, 0.0  ;;  %v2009_v51 = vor.u32 %v2200_v38, %v2008_v33  ;;  %v2177_v33 = vld [vmem:[%s3407_s5 + $0x44] sm:$0xf] }
  0xcf   : > { %v449_v61 = vmax.f32 %v416_v56, 0.0  ;;  %v467_v36 = vpack.c.bf16 %v458_v27, %v457_v13  ;;  %v1949_v56 = vor.u32 %v2183_v32, %v1946_v42  ;;  %976 = vmatpush.bf16.msrb.mxu0 %v2009_v51  ;;  %v2180_v27 = vld [vmem:[%s3407_s5 + $0x9c] sm:$0xf0]  ;;  %v1994_v32 = vld [vmem:[%s3407_s5 + $0xa8] sm:$0xf0]  ;;  %v1921_v42 = vor.u32 %v2178_v40, %v1920_v39 }
  0xd0   : > { %1025 = vmatpush.bf16.msrb.mxu1 %v2013_v60  ;;  %v1929_v29 = vor.u32 %v2180_v27, %v1928_v26  ;;  %v1997_v37 = vor.u32 %v2195_v31, %v1994_v32  ;;  %v2221_v60 = vld [vmem:[%s3407_s5 + $0x1d4] sm:$0xf]  ;;  %v2236_v26 = vld [vmem:[%s3407_s5 + $0x1b4] sm:$0xf0] }
  0xd1   : > { %1908 = vmatmul.msk.bf16.gmra.mxu2 %vm505_vm3, %v467_v36  ;;  %757 = vmatpush.bf16.msrb.mxu3 %v1949_v56  ;;  %v1993_v36 = vor.u32 %v2196_v30, %v1992_v28  ;;  %v2074_v40 = vld [vmem:[%s3407_s5 + $0x130] sm:$0xf0] }
  0xd2   : > { %v440_v50 = vpop.f32.mrf.mxu3 }
  0xd3   : > { %v441_v3 = vadd.f32 %v2594_v35, %v440_v50  ;;  %v1912_v50 = vld [vmem:[%s3407_s5] sm:$0xf] }
  0xd4   : > { %v417_v58 = vpop.f32.mrf.mxu0  ;;  %1026 = vmatpush.bf16.msrb.mxu1 %v2005_v25  ;;  %v2152_v25 = vld [vmem:[%s3407_s5 + $0x198] sm:$0xf] }
  0xd5   : > { %v418_v59 = vadd.f32 %v2594_v35, %v417_v58  ;;  %v1938_v58 = vld [vmem:[%s3407_s5 + $0xe0] sm:$0xf0]  ;;  %v459_v10 = vmax.f32 %v441_v3, 0.0  ;;  %v2097_v3 = vor.u32 %v2222_v1, %v2096_v0  ;;  %v2153_v27 = vor.u32 %v2236_v26, %v2152_v25  ;;  %v2136_v0 = vld [vmem:[%s3407_s5 + $0x118] sm:$0xf] }
  0xd6   : > { %v2232_v1 = vld [vmem:[%s3407_s5 + $0x134] sm:$0xf0] }
  0xd7   : > { %v450_v62 = vmax.f32 %v418_v59, 0.0  ;;  %v1953_v59 = vor.u32 %v2186_v49, %v1952_v48  ;;  %v2175_v48 = vld [vmem:[%s3407_s5 + $0x4] sm:$0xf] }
  0xd8   : > { %1027 = vmatpush.bf16.msrb.mxu1 %v1997_v37  ;;  %v1914_v49 = vld [vmem:[%s3407_s5 + $0x20] sm:$0xf0]  ;;  %v2218_v37 = vld [vmem:[%s3407_s5 + $0x16c] sm:$0xf0] }
  0xd9   : > { %v463_v63 = vpack.c.bf16 %v450_v62, %v449_v61  ;;  %v2000_v61 = vld [vmem:[%s3407_s5 + $0xc8] sm:$0xf]  ;;  %707 = vmatpush.bf16.msrb.mxu2 %v1953_v59  ;;  %v1917_v51 = vor.u32 %v2175_v48, %v1914_v49 }
  0xda   : > { %v2198_v62 = vld [vmem:[%s3407_s5 + $0xe4] sm:$0xf0]  ;;  %v442_v9 = vpop.f32.mrf.mxu3 }
  0xdb   : > { %1904 = vmatmul.msk.bf16.gmra.mxu1 %vm505_vm3, %v463_v63  ;;  %v2001_v2 = vor.u32 %v2198_v62, %v2000_v61  ;;  %v443_v11 = vadd.f32 %v2594_v35, %v442_v9  ;;  %v2098_v61 = vld [vmem:[%s3407_s5 + $0x1f0] sm:$0xf0]  ;;  %v2161_v9 = vor.u32 %v2238_v8, %v2160_v7 }
  0xdc   : > { %v420_v4 = vpop.f32.mrf.mxu0  ;;  %1028 = vmatpush.bf16.msrb.mxu1 %v1989_v47  ;;  %v2101_v62 = vor.u32 %v2221_v60, %v2098_v61  ;;  %v2233_v60 = vld [vmem:[%s3407_s5 + $0x15c] sm:$0xf] }
  0xdd   : > { %v421_v34 = vadd.f32 %v2594_v35, %v420_v4  ;;  %v1941_v4 = vor.u32 %v2181_v57, %v1938_v58  ;;  %977 = vmatpush.bf16.msrb.mxu0 %v2001_v2  ;;  %708 = vmatpush.bf16.msrb.mxu2 %v1945_v6  ;;  %v460_v13 = vmax.f32 %v443_v11, 0.0  ;;  %v2191_v57 = vld [vmem:[%s3407_s5 + $0xc] sm:$0xf]  ;;  %v2219_v2 = vld [vmem:[%s3407_s5 + $0x194] sm:$0xf] }
  0xde   : > { %v1978_v58 = vld [vmem:[%s3407_s5 + $0x28] sm:$0xf0]  ;;  %v2833_v6 = vld [vmem:[%s3406_s4] ss:$0 sm:$0xff]  ;;  %v2146_v61 = vld [vmem:[%s3407_s5 + $0x178] sm:$0xf0] }
  0xdf   : > { %v451_v54 = vmax.f32 %v421_v34, 0.0  ;;  %758 = vmatpush.bf16.msrb.mxu3 %v1941_v4  ;;  %v468_v15 = vpack.c.bf16 %v460_v13, %v459_v10  ;;  %v1922_v34 = vld [vmem:[%s3407_s5 + $0x60] sm:$0xf0]  ;;  %v1981_v59 = vor.u32 %v2191_v57, %v1978_v58  ;;  %v2090_v4 = vld [vmem:[%s3407_s5 + $0x1b0] sm:$0xf0] }
  0xe0   : > { %v1925_v38 = vor.u32 %v2177_v33, %v1922_v34  ;;  %v2213_v57 = vld [vmem:[%s3407_s5 + $0xd4] sm:$0xf] }
  0xe1   : > { %1909 = vmatmul.msk.bf16.gmra.mxu2 %vm505_vm3, %v468_v15  ;;  %978 = vmatpush.bf16.msrb.mxu0 %v1993_v36  ;;  %v2080_v36 = vld [vmem:[%s3407_s5 + $0x150] sm:$0xf] }
  0xe2   : > { %1029 = vmatpush.bf16.msrb.mxu1 %v1981_v59  ;;  %v2081_v39 = vor.u32 %v2218_v37, %v2080_v36  ;;  %v2066_v59 = vld [vmem:[%s3407_s5 + $0xf0] sm:$0xf0] }
  0xe3   : > { %759 = vmatpush.bf16.msrb.mxu3 %v1933_v12  ;;  %v2209_v36 = vld [vmem:[%s3407_s5 + $0x54] sm:$0xf] }
  0xe4   : > { %v422_v41 = vpop.f32.mrf.mxu0 }
  0xe5   : > { %v423_v46 = vadd.f32 %v2594_v35, %v422_v41  ;;  %v1984_v41 = vld [vmem:[%s3407_s5 + $0x48] sm:$0xf] }
  0xe7   : > { %v452_v55 = vmax.f32 %v423_v46, 0.0  ;;  %760 = vmatpush.bf16.msrb.mxu3 %v1925_v38  ;;  %v1985_v46 = vor.u32 %v2194_v43, %v1984_v41  ;;  %v2215_v38 = vld [vmem:[%s3407_s5 + $0x114] sm:$0xf]  ;;  %v2154_v43 = vld [vmem:[%s3407_s5 + $0x1b8] sm:$0xf0] }
  0xe8   : > { %v2077_v41 = vor.u32 %v2215_v38, %v2074_v40  ;;  %v2050_v38 = vld [vmem:[%s3407_s5 + $0x70] sm:$0xf0]  ;;  %v2130_v40 = vld [vmem:[%s3407_s5 + $0xf8] sm:$0xf0] }
  0xe9   : > { %v464_v63 = vpack.c.bf16 %v452_v55, %v451_v54  ;;  %979 = vmatpush.bf16.msrb.mxu0 %v1985_v46  ;;  %v2192_v54 = vld [vmem:[%s3407_s5 + $0x24] sm:$0xf0]  ;;  %v1913_v55 = vor.u32 %v2176_v52, %v1912_v50  ;;  %v2234_v46 = vld [vmem:[%s3407_s5 + $0x174] sm:$0xf0] }
  0xea   : > { %v1977_v56 = vor.u32 %v2192_v54, %v1976_v53  ;;  %v2145_v47 = vor.u32 %v2234_v46, %v2144_v45  ;;  %v2228_v45 = vld [vmem:[%s3407_s5 + $0xb4] sm:$0xf0] }
  0xeb   : > { %1905 = vmatmul.msk.bf16.gmra.mxu1 %vm505_vm3, %v464_v63  ;;  %761 = vmatpush.bf16.msrb.mxu3 %v1917_v51 }
  0xec   : > { %v425_v5 = vpop.f32.mrf.mxu0 }
  0xed   : > { %v426_v14 = vadd.f32 %v2594_v35, %v425_v5  ;;  %980 = vmatpush.bf16.msrb.mxu0 %v1977_v56  ;;  %v2093_v5 = vor.u32 %v2219_v2, %v2090_v4  ;;  %v2216_v56 = vld [vmem:[%s3407_s5 + $0x12c] sm:$0xf0]  ;;  %v2137_v2 = vor.u32 %v2232_v1, %v2136_v0  ;;  %v2112_v1 = vld [vmem:[%s3407_s5 + $0x58] sm:$0xf] }
  0xef   : > { %v453_v18 = vmax.f32 %v426_v14, 0.0  ;;  %1290 = vmatpush.bf16.msra.mxu3 %v2101_v62  ;;  %v2069_v62 = vor.u32 %v2213_v57, %v2066_v59  ;;  %v2207_v57 = vld [vmem:[%s3407_s5 + $0x14] sm:$0xf] }
  0xf0   : > { %v2042_v59 = vld [vmem:[%s3407_s5 + $0x30] sm:$0xf0] }
  0xf1   : > { %1509 = vmatpush.bf16.msra.mxu0 %v2161_v9 }
  0xf3   : > { %1291 = vmatpush.bf16.msra.mxu3 %v2093_v5 }
  0xf4   : > { %v427_v16 = vpop.f32.mrf.mxu0 }
  0xf5   : > { %v428_v17 = vadd.f32 %v2594_v35, %v427_v16  ;;  %v1937_v35 = vor.u32 %v2182_v22, %v1936_v21  ;;  %v2082_v21 = vld [vmem:[%s3407_s5 + $0x170] sm:$0xf0]  ;;  %1510 = vmatpush.bf16.msra.mxu0 %v2153_v27 }
  0xf7   : > { %v454_v19 = vmax.f32 %v428_v17, 0.0  ;;  %709 = vmatpush.bf16.msrb.mxu2 %v1937_v35  ;;  %v2088_v17 = vld [vmem:[%s3407_s5 + $0x190] sm:$0xf]  ;;  %v2162_v35 = vld [vmem:[%s3407_s5 + $0x1f8] sm:$0xf0] }
  0xf8   : > { %v2867_v24 = vor.u32 %v2237_v23, %v2162_v35  ;;  %v2230_v23 = vld [vmem:[%s3407_s5 + $0xf4] sm:$0xf0] }
  0xf9   : > { %v465_v20 = vpack.c.bf16 %v454_v19, %v453_v18  ;;  %v2220_v18 = vld [vmem:[%s3407_s5 + $0x1ac] sm:$0xf0]  ;;  %v2217_v19 = vld [vmem:[%s3407_s5 + $0x154] sm:$0xf]  ;;  %1511 = vmatpush.bf16.msra.mxu0 %v2145_v47 }
  0xfa   : > { %v2085_v22 = vor.u32 %v2217_v19, %v2082_v21  ;;  %1558 = vmatpush.bf16.msra.mxu1 %v2867_v24  ;;  %v2138_v19 = vld [vmem:[%s3407_s5 + $0x138] sm:$0xf0] }
  0xfb   : > { %1906 = vmatmul.msk.bf16.gmra.mxu1 %vm505_vm3, %v465_v20  ;;  %710 = vmatpush.bf16.msrb.mxu2 %v1929_v29  ;;  %v2089_v20 = vor.u32 %v2220_v18, %v2088_v17  ;;  %v2058_v17 = vld [vmem:[%s3407_s5 + $0xb0] sm:$0xf0]  ;;  %v2231_v18 = vld [vmem:[%s3407_s5 + $0x11c] sm:$0xf] }
  0xfc   : > { %1292 = vmatpush.bf16.msra.mxu3 %v2085_v22  ;;  %v2972_v21 = vor.u32 %v2231_v18, %v2138_v19  ;;  %v2128_v22 = vld [vmem:[%s3407_s5 + $0xd8] sm:$0xf]  ;;  %v2106_v19 = vld [vmem:[%s3407_s5 + $0x38] sm:$0xf0] }
  0xfd   : > { %1512 = vmatpush.bf16.msra.mxu0 %v2137_v2  ;;  %v2129_v35 = vor.u32 %v2230_v23, %v2128_v22  ;;  %v2226_v2 = vld [vmem:[%s3407_s5 + $0x74] sm:$0xf0] }
  0xff   : > { %711 = vmatpush.bf16.msrb.mxu2 %v1921_v42  ;;  %v2235_v42 = vld [vmem:[%s3407_s5 + $0x19c] sm:$0xf] }
 0x100   : > { %1293 = vmatpush.bf16.msra.mxu3 %v2077_v41  ;;  %v2902_v44 = vor.u32 %v2235_v42, %v2154_v43  ;;  %v2053_v41 = vor.u32 %v2209_v36, %v2050_v38  ;;  %v2120_v43 = vld [vmem:[%s3407_s5 + $0x98] sm:$0xf] }
 0x101   : > { %1513 = vmatpush.bf16.msra.mxu0 %v2129_v35  ;;  %v2121_v46 = vor.u32 %v2228_v45, %v2120_v43 }
 0x102   : > { %1559 = vmatpush.bf16.msra.mxu1 %v2902_v44 }
 0x103   : > { %712 = vmatpush.bf16.msrb.mxu2 %v1913_v55  ;;  %v2072_v55 = vld [vmem:[%s3407_s5 + $0x110] sm:$0xf] }
 0x104   : > { %v2073_v58 = vor.u32 %v2216_v56, %v2072_v55  ;;  %1294 = vmatpush.bf16.msra.mxu3 %v2069_v62  ;;  %v2048_v55 = vld [vmem:[%s3407_s5 + $0x50] sm:$0xf]  ;;  %v2045_v62 = vor.u32 %v2207_v57, %v2042_v59 }
 0x105   : > { %1514 = vmatpush.bf16.msra.mxu0 %v2121_v46  ;;  %v2210_v56 = vld [vmem:[%s3407_s5 + $0x6c] sm:$0xf0] }
 0x107   : > { %1241 = vmatpush.bf16.msra.mxu2 %v2097_v3 }
 0x10b   : > { %1242 = vmatpush.bf16.msra.mxu2 %v2089_v20 }
 0x10f   : > { %1243 = vmatpush.bf16.msra.mxu2 %v2081_v39  ;;  %v2229_v39 = vld [vmem:[%s3407_s5 + $0xdc] sm:$0xf] }
 0x110   : > { %v3007_v42 = vor.u32 %v2229_v39, %v2130_v40  ;;  %v619_v39 = vld [vmem:[%s3408_s6] sm:$0x3] }
 0x111   : > { %v3109_v43 = vperm.slane %v619_v39, 0  ;;  %v3111_v45 = vperm.slane %v619_v39, 1 }
 0x113   : > { %1244 = vmatpush.bf16.msra.mxu2 %v2073_v58  ;;  %v2049_v58 = vor.u32 %v2210_v56, %v2048_v55 }
 0x138   : > { %v539_v63 = vpop.f32.mrf.mxu1 }
 0x139   : > { %v540_v10 = vadd.f32 %v2833_v6, %v539_v63  ;;  %v2937_v63 = vor.u32 %v2233_v60, %v2146_v61  ;;  %v2227_v60 = vld [vmem:[%s3407_s5 + $0x9c] sm:$0xf] }
 0x13a   : > { %v2122_v61 = vld [vmem:[%s3407_s5 + $0xb8] sm:$0xf0] }
 0x13b   : > { %v579_v13 = vmax.f32 %v540_v10, 0.0  ;;  %1560 = vmatpush.bf16.msra.mxu1 %v2937_v63  ;;  %v2125_v0 = vor.u32 %v2227_v60, %v2122_v61 }
 0x13f   : > { %1561 = vmatpush.bf16.msra.mxu1 %v2972_v21 }
 0x140   : > { %v541_v11 = vpop.f32.mrf.mxu1 }
 0x141   : > { %v542_v12 = vadd.f32 %v2833_v6, %v541_v11 }
 0x143   : > { %v580_v14 = vmax.f32 %v542_v12, 0.0  ;;  %v2064_v12 = vld [vmem:[%s3407_s5 + $0xd0] sm:$0xf]  ;;  %1562 = vmatpush.bf16.msra.mxu1 %v3007_v42 }
 0x144   : > { %v564_v11 = vpop.f32.mrf.mxu2 }
 0x145   : > { %v2843_v15 = vpack.c.bf16 %v580_v14, %v579_v13  ;;  %v2214_v13 = vld [vmem:[%s3407_s5 + $0xec] sm:$0xf0]  ;;  %v2211_v14 = vld [vmem:[%s3407_s5 + $0x94] sm:$0xf] }
 0x146   : > { %v2061_v20 = vor.u32 %v2211_v14, %v2058_v17  ;;  %v2040_v14 = vld [vmem:[%s3407_s5 + $0x10] sm:$0xf]  ;;  %v2104_v17 = vld [vmem:[%s3407_s5 + $0x18] sm:$0xf] }
 0x147   : > { %713 = vmatmul.bf16.vlgmr.msrb.gmra.mxu2 %v2843_v15  ;;  %762 = vmatmul.bf16.vlgmr.msrb.gmra.mxu3 %v2843_v15 }
 0x148   : > { %981 = vmatmul.bf16.vlgmr.msrb.gmra.mxu0 %v2843_v15  ;;  %1030 = vmatmul.bf16.vlgmr.msrb.gmra.mxu1 %v2843_v15  ;;  %v544_v16 = vpop.f32.mrf.mxu1 }
 0x149   : > { %v545_v28 = vadd.f32 %v2833_v6, %v544_v16  ;;  %v2065_v16 = vor.u32 %v2214_v13, %v2064_v12  ;;  %1295 = vmatpush.bf16.msra.mxu3 %v2061_v20  ;;  %1563 = vmatpush.bf16.msra.mxu1 %v2125_v0 }
 0x14b   : > { %v581_v31 = vmax.f32 %v545_v28, 0.0  ;;  %1245 = vmatpush.bf16.msra.mxu2 %v2065_v16  ;;  %v2208_v16 = vld [vmem:[%s3407_s5 + $0x2c] sm:$0xf0] }
 0x14c   : > { %v566_v28 = vpop.f32.mrf.mxu2  ;;  %v2041_v18 = vor.u32 %v2208_v16, %v2040_v14 }
 0x14d   : > { %1296 = vmatpush.bf16.msra.mxu3 %v2053_v41 }
 0x150   : > { %v546_v29 = vpop.f32.mrf.mxu1 }
 0x151   : > { %v547_v30 = vadd.f32 %v2833_v6, %v546_v29  ;;  %1297 = vmatpush.bf16.msra.mxu3 %v2045_v62 }
 0x153   : > { %v582_v32 = vmax.f32 %v547_v30, 0.0 }
 0x154   : > { %v569_v47 = vpop.f32.mrf.mxu2 }
 0x155   : > { %v2878_v33 = vpack.c.bf16 %v582_v32, %v581_v31  ;;  %v2056_v32 = vld [vmem:[%s3407_s5 + $0x90] sm:$0xf]  ;;  %2244 = vmatpush.bf16.msrb.mxu3 %v2867_v24  ;;  %v2224_v24 = vld [vmem:[%s3407_s5 + $0x34] sm:$0xf0] }
 0x156   : > { %v2105_v20 = vor.u32 %v2224_v24, %v2104_v17 }
 0x157   : > { %718 = vmatmul.bf16.gmra.mxu2 %v2878_v33  ;;  %767 = vmatmul.bf16.gmra.mxu3 %v2878_v33 }
 0x158   : > { %986 = vmatmul.bf16.gmra.mxu0 %v2878_v33  ;;  %1035 = vmatmul.bf16.gmra.mxu1 %v2878_v33  ;;  %v549_v34 = vpop.f32.mrf.mxu1 }
 0x159   : > { %v550_v48 = vadd.f32 %v2833_v6, %v549_v34  ;;  %v2212_v34 = vld [vmem:[%s3407_s5 + $0xac] sm:$0xf0]  ;;  %2245 = vmatpush.bf16.msrb.mxu3 %v2902_v44  ;;  %v2223_v44 = vld [vmem:[%s3407_s5 + $0x1c] sm:$0xf] }
 0x15a   : > { %v2057_v37 = vor.u32 %v2212_v34, %v2056_v32  ;;  %v2109_v22 = vor.u32 %v2223_v44, %v2106_v19  ;;  %v887_v32 = vld [vmem:[%s3408_s6 + $0x2] sm:$0x3] }
 0x15b   : > { %v583_v51 = vmax.f32 %v550_v48, 0.0  ;;  %v565_v48 = vadd.f32 %v2833_v6, %v564_v11  ;;  %v3102_v38 = vperm.slane %v887_v32, 1 }
 0x15c   : > { %1246 = vmatpush.bf16.msra.mxu2 %v2057_v37  ;;  %v3100_v37 = vperm.slane %v887_v32, 0 }
 0x15d   : > { %2246 = vmatpush.bf16.msrb.mxu3 %v2937_v63 }
 0x160   : > { %v551_v49 = vpop.f32.mrf.mxu1  ;;  %1247 = vmatpush.bf16.msra.mxu2 %v2049_v58 }
 0x161   : > { %v552_v50 = vadd.f32 %v2833_v6, %v551_v49  ;;  %v567_v49 = vadd.f32 %v2833_v6, %v566_v28  ;;  %2247 = vmatpush.bf16.msrb.mxu3 %v2972_v21 }
 0x163   : > { %v584_v52 = vmax.f32 %v552_v50, 0.0  ;;  %v589_v50 = vmax.f32 %v565_v48, 0.0 }
 0x164   : > { %1248 = vmatpush.bf16.msra.mxu2 %v2041_v18 }
 0x165   : > { %v2913_v53 = vpack.c.bf16 %v584_v52, %v583_v51  ;;  %v590_v51 = vmax.f32 %v567_v49, 0.0  ;;  %2248 = vmatpush.bf16.msrb.mxu3 %v3007_v42 }
 0x167   : > { %723 = vmatmul.bf16.gmra.mxu2 %v2913_v53  ;;  %772 = vmatmul.bf16.gmra.mxu3 %v2913_v53  ;;  %v3018_v52 = vpack.c.bf16 %v590_v51, %v589_v50 }
 0x168   : > { %991 = vmatmul.bf16.gmra.mxu0 %v2913_v53  ;;  %1040 = vmatmul.bf16.gmra.mxu1 %v2913_v53  ;;  %v554_v54 = vpop.f32.mrf.mxu1 }
 0x169   : > { %v555_v3 = vadd.f32 %v2833_v6, %v554_v54  ;;  %v571_v54 = vpop.f32.mrf.mxu2  ;;  %2249 = vmatpush.bf16.msrb.mxu3 %v2125_v0 }
 0x16b   : > { %v585_v7 = vmax.f32 %v555_v3, 0.0  ;;  %v2225_v3 = vld [vmem:[%s3407_s5 + $0x5c] sm:$0xf] }
 0x170   : > { %v556_v4 = vpop.f32.mrf.mxu1 }
 0x171   : > { %v557_v5 = vadd.f32 %v2833_v6, %v556_v4  ;;  %v2113_v4 = vor.u32 %v2226_v2, %v2112_v1  ;;  %v574_v11 = vpop.f32.mrf.mxu2 }
 0x173   : > { %v586_v8 = vmax.f32 %v557_v5, 0.0  ;;  %v2114_v5 = vld [vmem:[%s3407_s5 + $0x78] sm:$0xf0]  ;;  %1515 = vmatpush.bf16.msra.mxu0 %v2113_v4 }
 0x175   : > { %v2948_v9 = vpack.c.bf16 %v586_v8, %v585_v7  ;;  %v2117_v7 = vor.u32 %v2225_v3, %v2114_v5  ;;  %v570_v8 = vadd.f32 %v2833_v6, %v569_v47 }
 0x177   : > { %728 = vmatmul.bf16.gmra.mxu2 %v2948_v9  ;;  %777 = vmatmul.bf16.gmra.mxu3 %v2948_v9  ;;  %v591_v12 = vmax.f32 %v570_v8, 0.0 }
 0x178   : > { %996 = vmatmul.bf16.gmra.mxu0 %v2948_v9  ;;  %1045 = vmatmul.bf16.gmra.mxu1 %v2948_v9  ;;  %v559_v10 = vpop.f32.mrf.mxu1 }
 0x179   : > { %v560_v25 = vadd.f32 %v2833_v6, %v559_v10  ;;  %v572_v10 = vadd.f32 %v2833_v6, %v571_v54  ;;  %1564 = vmatpush.bf16.msra.mxu1 %v2117_v7  ;;  %1516 = vmatpush.bf16.msra.mxu0 %v2105_v20  ;;  %v576_v35 = vpop.f32.mrf.mxu2 }
 0x17a   : > { %2250 = vmatpush.bf16.msrb.mxu3 %v2117_v7 }
 0x17b   : > { %v587_v29 = vmax.f32 %v560_v25, 0.0  ;;  %v592_v13 = vmax.f32 %v572_v10, 0.0  ;;  %v575_v25 = vadd.f32 %v2833_v6, %v574_v11 }
 0x17d   : > { %v3076_v23 = vpack.c.bf16 %v592_v13, %v591_v12  ;;  %1565 = vmatpush.bf16.msra.mxu1 %v2109_v22  ;;  %v593_v63 = vmax.f32 %v575_v25, 0.0 }
 0x17e   : > { %2251 = vmatpush.bf16.msrb.mxu3 %v2109_v22 }
 0x180   : > { %v561_v26 = vpop.f32.mrf.mxu1 }
 0x181   : > { %v562_v27 = vadd.f32 %v2833_v6, %v561_v26  ;;  %v577_v26 = vadd.f32 %v2833_v6, %v576_v35 }
 0x183   : > { %v588_v30 = vmax.f32 %v562_v27, 0.0  ;;  %v594_v27 = vmax.f32 %v577_v26, 0.0 }
 0x185   : > { %v2983_v31 = vpack.c.bf16 %v588_v30, %v587_v29  ;;  %v3087_v28 = vpack.c.bf16 %v594_v27, %v593_v63 }
 0x187   : > { %733 = vmatmul.bf16.gmra.mxu2 %v2983_v31  ;;  %782 = vmatmul.bf16.gmra.mxu3 %v2983_v31 }
 0x188   : > { %1001 = vmatmul.bf16.gmra.mxu0 %v2983_v31  ;;  %1050 = vmatmul.bf16.gmra.mxu1 %v2983_v31 }
 0x197   : > { %738 = vmatmul.bf16.gmra.mxu2 %v3018_v52  ;;  %787 = vmatmul.bf16.gmra.mxu3 %v3018_v52 }
 0x198   : > { %1006 = vmatmul.bf16.gmra.mxu0 %v3018_v52  ;;  %1055 = vmatmul.bf16.gmra.mxu1 %v3018_v52 }
 0x1a7   : > { %743 = vmatmul.bf16.gmra.mxu2 %v3076_v23  ;;  %792 = vmatmul.bf16.gmra.mxu3 %v3076_v23 }
 0x1a8   : > { %1011 = vmatmul.bf16.gmra.mxu0 %v3076_v23  ;;  %1060 = vmatmul.bf16.gmra.mxu1 %v3076_v23 }
 0x1b7   : > { %748 = vmatmul.bf16.gmra.mxu2 %v3087_v28  ;;  %797 = vmatmul.bf16.gmra.mxu3 %v3087_v28 }
 0x1b8   : > { %1016 = vmatmul.bf16.gmra.mxu0 %v3087_v28  ;;  %1065 = vmatmul.bf16.gmra.mxu1 %v3087_v28 }
 0x1c5   : > { %v982_v21 = vpop.f32.mrf.mxu0  ;;  %v1031_v29 = vpop.f32.mrf.mxu1 }
 0x1c6   : > { %v1032_v42 = vadd.f32 %v1031_v29, %v3102_v38 }
 0x1c7   : > { %1249 = vmatmul.bf16.vlgmr.msra.gmra.mxu2 %v2843_v15  ;;  %1298 = vmatmul.bf16.vlgmr.msra.gmra.mxu3 %v2843_v15 }
 0x1c8   : > { %1517 = vmatmul.bf16.vlgmr.msra.gmra.mxu0 %v2843_v15  ;;  %1566 = vmatmul.bf16.vlgmr.msra.gmra.mxu1 %v2843_v15  ;;  %v983_v15 = vadd.f32 %v982_v21, %v3100_v37  ;;  %v1072_v51 = vmax.f32 %v1032_v42, 0.0 }
 0x1ca   : > { %v714_v6 = vpop.f32.mrf.mxu2  ;;  %v763_v30 = vpop.f32.mrf.mxu3  ;;  %v1071_v50 = vmax.f32 %v983_v15, 0.0 }
 0x1cb   : > { %v715_v56 = vadd.f32 %v714_v6, %v3109_v43  ;;  %v764_v57 = vadd.f32 %v763_v30, %v3111_v45 }
 0x1cd   : > { %v984_v34 = vpop.f32.mrf.mxu0  ;;  %v1033_v36 = vpop.f32.mrf.mxu1  ;;  %v803_v3 = vmax.f32 %v715_v56, 0.0  ;;  %v804_v4 = vmax.f32 %v764_v57, 0.0 }
 0x1ce   : > { %v985_v1 = vadd.f32 %v984_v34, %v3100_v37  ;;  %v1034_v2 = vadd.f32 %v1033_v36, %v3102_v38 }
 0x1d0   : > { %v1073_v14 = vmax.f32 %v985_v1, 0.0  ;;  %v1074_v16 = vmax.f32 %v1034_v2, 0.0 }
 0x1d2   : > { %v716_v40 = vpop.f32.mrf.mxu2  ;;  %v765_v41 = vpop.f32.mrf.mxu3 }
 0x1d3   : > { %v717_v24 = vadd.f32 %v716_v40, %v3109_v43  ;;  %v766_v44 = vadd.f32 %v765_v41, %v3111_v45 }
 0x1d5   : > { %v987_v46 = vpop.f32.mrf.mxu0  ;;  %v1036_v47 = vpop.f32.mrf.mxu1  ;;  %v805_v63 = vmax.f32 %v717_v24, 0.0  ;;  %v806_v27 = vmax.f32 %v766_v44, 0.0 }
 0x1d6   : > { %v988_v48 = vadd.f32 %v987_v46, %v3100_v37  ;;  %v1037_v49 = vadd.f32 %v1036_v47, %v3102_v38 }
 0x1d7   : > { %1254 = vmatmul.bf16.gmra.mxu2 %v2878_v33  ;;  %1303 = vmatmul.bf16.gmra.mxu3 %v2878_v33 }
 0x1d8   : > { %v1075_v54 = vmax.f32 %v988_v48, 0.0  ;;  %v1076_v55 = vmax.f32 %v1037_v49, 0.0  ;;  %1522 = vmatmul.bf16.gmra.mxu0 %v2878_v33  ;;  %1571 = vmatmul.bf16.gmra.mxu1 %v2878_v33 }
 0x1da   : > { %v1103_v58 = vmax.f32 %v1071_v50, %v1075_v54  ;;  %v1118_v59 = vmax.f32 %v1072_v51, %v1076_v55  ;;  %v719_v60 = vpop.f32.mrf.mxu2  ;;  %v768_v61 = vpop.f32.mrf.mxu3 }
 0x1db   : > { %v720_v62 = vadd.f32 %v719_v60, %v3109_v43  ;;  %v769_v0 = vadd.f32 %v768_v61, %v3111_v45 }
 0x1dd   : > { %v807_v5 = vmax.f32 %v720_v62, 0.0  ;;  %v808_v33 = vmax.f32 %v769_v0, 0.0  ;;  %v989_v7 = vpop.f32.mrf.mxu0  ;;  %v1038_v8 = vpop.f32.mrf.mxu1 }
 0x1de   : > { %v990_v10 = vadd.f32 %v989_v7, %v3100_v37  ;;  %v1039_v11 = vadd.f32 %v1038_v8, %v3102_v38 }
 0x1df   : > { %v835_v12 = vmax.f32 %v803_v3, %v807_v5  ;;  %v850_v13 = vmax.f32 %v804_v4, %v808_v33 }
 0x1e0   : > { %v1077_v17 = vmax.f32 %v990_v10, 0.0  ;;  %v1078_v18 = vmax.f32 %v1039_v11, 0.0 }
 0x1e2   : > { %v1104_v19 = vmax.f32 %v1073_v14, %v1077_v17  ;;  %v1119_v20 = vmax.f32 %v1074_v16, %v1078_v18  ;;  %v721_v22 = vpop.f32.mrf.mxu2  ;;  %v770_v35 = vpop.f32.mrf.mxu3 }
 0x1e3   : > { %v722_v25 = vadd.f32 %v721_v22, %v3109_v43  ;;  %v771_v26 = vadd.f32 %v770_v35, %v3111_v45 }
 0x1e5   : > { %v809_v21 = vmax.f32 %v722_v25, 0.0  ;;  %v810_v29 = vmax.f32 %v771_v26, 0.0  ;;  %v992_v6 = vpop.f32.mrf.mxu0  ;;  %v1041_v30 = vpop.f32.mrf.mxu1 }
 0x1e6   : > { %v993_v32 = vadd.f32 %v992_v6, %v3100_v37  ;;  %v1042_v34 = vadd.f32 %v1041_v30, %v3102_v38 }
 0x1e7   : > { %v836_v36 = vmax.f32 %v805_v63, %v809_v21  ;;  %v851_v39 = vmax.f32 %v806_v27, %v810_v29  ;;  %1259 = vmatmul.bf16.gmra.mxu2 %v2913_v53  ;;  %1308 = vmatmul.bf16.gmra.mxu3 %v2913_v53 }
 0x1e8   : > { %v1079_v40 = vmax.f32 %v993_v32, 0.0  ;;  %v1080_v41 = vmax.f32 %v1042_v34, 0.0  ;;  %1527 = vmatmul.bf16.gmra.mxu0 %v2913_v53  ;;  %1576 = vmatmul.bf16.gmra.mxu1 %v2913_v53 }
 0x1ea   : > { %v1105_v15 = vmax.f32 %v1103_v58, %v1079_v40  ;;  %v1120_v42 = vmax.f32 %v1118_v59, %v1080_v41  ;;  %v724_v46 = vpop.f32.mrf.mxu2  ;;  %v773_v47 = vpop.f32.mrf.mxu3 }
 0x1eb   : > { %v725_v48 = vadd.f32 %v724_v46, %v3109_v43  ;;  %v774_v49 = vadd.f32 %v773_v47, %v3111_v45 }
 0x1ed   : > { %v811_v50 = vmax.f32 %v725_v48, 0.0  ;;  %v812_v51 = vmax.f32 %v774_v49, 0.0  ;;  %v994_v54 = vpop.f32.mrf.mxu0  ;;  %v1043_v55 = vpop.f32.mrf.mxu1 }
 0x1ee   : > { %v995_v56 = vadd.f32 %v994_v54, %v3100_v37  ;;  %v1044_v57 = vadd.f32 %v1043_v55, %v3102_v38 }
 0x1ef   : > { %v837_v60 = vmax.f32 %v835_v12, %v811_v50  ;;  %v852_v61 = vmax.f32 %v850_v13, %v812_v51 }
 0x1f0   : > { %v1081_v62 = vmax.f32 %v995_v56, 0.0  ;;  %v1082_v53 = vmax.f32 %v1044_v57, 0.0 }
 0x1f2   : > { %v3141_v58 = vmax.f32 %v1104_v19, %v1081_v62  ;;  %v3143_v59 = vmax.f32 %v1119_v20, %v1082_v53  ;;  %v726_v0 = vpop.f32.mrf.mxu2  ;;  %v775_v1 = vpop.f32.mrf.mxu3 }
 0x1f3   : > { %v727_v2 = vadd.f32 %v726_v0, %v3109_v43  ;;  %v776_v3 = vadd.f32 %v775_v1, %v3111_v45 }
 0x1f5   : > { %v813_v4 = vmax.f32 %v727_v2, 0.0  ;;  %v814_v5 = vmax.f32 %v776_v3, 0.0  ;;  %v997_v33 = vpop.f32.mrf.mxu0  ;;  %v1046_v7 = vpop.f32.mrf.mxu1 }
 0x1f6   : > { %v998_v8 = vadd.f32 %v997_v33, %v3100_v37  ;;  %v1047_v10 = vadd.f32 %v1046_v7, %v3102_v38 }
 0x1f7   : > { %v3149_v11 = vmax.f32 %v836_v36, %v813_v4  ;;  %v3151_v12 = vmax.f32 %v851_v39, %v814_v5  ;;  %1264 = vmatmul.bf16.gmra.mxu2 %v2948_v9  ;;  %1313 = vmatmul.bf16.gmra.mxu3 %v2948_v9 }
 0x1f8   : > { %v1083_v13 = vmax.f32 %v998_v8, 0.0  ;;  %v1084_v14 = vmax.f32 %v1047_v10, 0.0  ;;  %1532 = vmatmul.bf16.gmra.mxu0 %v2948_v9  ;;  %1581 = vmatmul.bf16.gmra.mxu1 %v2948_v9 }
 0x1fa   : > { %v3157_v16 = vmax.f32 %v1105_v15, %v1083_v13  ;;  %v3159_v17 = vmax.f32 %v1120_v42, %v1084_v14  ;;  %v729_v18 = vpop.f32.mrf.mxu2  ;;  %v778_v24 = vpop.f32.mrf.mxu3 }
 0x1fb   : > { %v730_v44 = vadd.f32 %v729_v18, %v3109_v43  ;;  %v779_v19 = vadd.f32 %v778_v24, %v3111_v45 }
 0x1fd   : > { %v815_v20 = vmax.f32 %v730_v44, 0.0  ;;  %v816_v22 = vmax.f32 %v779_v19, 0.0  ;;  %v999_v35 = vpop.f32.mrf.mxu0  ;;  %v1048_v25 = vpop.f32.mrf.mxu1 }
 0x1fe   : > { %v1000_v51 = vadd.f32 %v999_v35, %v3100_v37  ;;  %v1049_v54 = vadd.f32 %v1048_v25, %v3102_v38 }
 0x1ff   : > { %v3163_v26 = vmax.f32 %v837_v60, %v815_v20  ;;  %v3165_v63 = vmax.f32 %v852_v61, %v816_v22 }
 0x200   : > { %v1085_v60 = vmax.f32 %v1000_v51, 0.0  ;;  %v1086_v61 = vmax.f32 %v1049_v54, 0.0 }
 0x202   : > { %v731_v27 = vpop.f32.mrf.mxu2  ;;  %v780_v9 = vpop.f32.mrf.mxu3  ;;  %v1108_v7 = vmax.f32 %v3141_v58, %v1085_v60  ;;  %v1123_v8 = vmax.f32 %v3143_v59, %v1086_v61 }
 0x203   : > { %v781_v55 = vadd.f32 %v780_v9, %v3111_v45 }
 0x205   : > { %v1002_v21 = vpop.f32.mrf.mxu0  ;;  %v1051_v29 = vpop.f32.mrf.mxu1 }
 0x206   : > { %v1003_v62 = vadd.f32 %v1002_v21, %v3100_v37  ;;  %v1052_v53 = vadd.f32 %v1051_v29, %v3102_v38 }
 0x207   : > { %1269 = vmatmul.bf16.gmra.mxu2 %v2983_v31  ;;  %1318 = vmatmul.bf16.gmra.mxu3 %v2983_v31 }
 0x208   : > { %1537 = vmatmul.bf16.gmra.mxu0 %v2983_v31  ;;  %1586 = vmatmul.bf16.gmra.mxu1 %v2983_v31  ;;  %v1087_v14 = vmax.f32 %v1003_v62, 0.0  ;;  %v1088_v18 = vmax.f32 %v1052_v53, 0.0 }
 0x20a   : > { %v734_v6 = vpop.f32.mrf.mxu2  ;;  %v783_v30 = vpop.f32.mrf.mxu3 }
 0x20b   : > { %v735_v0 = vadd.f32 %v734_v6, %v3109_v43  ;;  %v784_v1 = vadd.f32 %v783_v30, %v3111_v45 }
 0x20d   : > { %v1004_v32 = vpop.f32.mrf.mxu0  ;;  %v1053_v34 = vpop.f32.mrf.mxu1  ;;  %v819_v24 = vmax.f32 %v735_v0, 0.0  ;;  %v820_v44 = vmax.f32 %v784_v1, 0.0 }
 0x20e   : > { %v1005_v5 = vadd.f32 %v1004_v32, %v3100_v37  ;;  %v1054_v33 = vadd.f32 %v1053_v34, %v3102_v38  ;;  %v1124_v32 = vmax.f32 %v3159_v17, %v1088_v18 }
 0x20f   : > { %v841_v34 = vmax.f32 %v3163_v26, %v819_v24 }
 0x210   : > { %v1089_v25 = vmax.f32 %v1005_v5, 0.0  ;;  %v1090_v58 = vmax.f32 %v1054_v33, 0.0 }
 0x212   : > { %v736_v36 = vpop.f32.mrf.mxu2  ;;  %v785_v39 = vpop.f32.mrf.mxu3  ;;  %v1110_v54 = vmax.f32 %v1108_v7, %v1089_v25 }
 0x213   : > { %v737_v10 = vadd.f32 %v736_v36, %v3109_v43  ;;  %v786_v13 = vadd.f32 %v785_v39, %v3111_v45  ;;  %v856_v36 = vmax.f32 %v3165_v63, %v820_v44 }
 0x215   : > { %v1007_v40 = vpop.f32.mrf.mxu0  ;;  %v1056_v41 = vpop.f32.mrf.mxu1  ;;  %v821_v29 = vmax.f32 %v737_v10, 0.0  ;;  %v822_v6 = vmax.f32 %v786_v13, 0.0 }
 0x216   : > { %v1008_v22 = vadd.f32 %v1007_v40, %v3100_v37  ;;  %v1057_v35 = vadd.f32 %v1056_v41, %v3102_v38 }
 0x217   : > { %1274 = vmatmul.bf16.gmra.mxu2 %v3018_v52  ;;  %1323 = vmatmul.bf16.gmra.mxu3 %v3018_v52 }
 0x218   : > { %1542 = vmatmul.bf16.gmra.mxu0 %v3018_v52  ;;  %1591 = vmatmul.bf16.gmra.mxu1 %v3018_v52  ;;  %v732_v52 = vadd.f32 %v731_v27, %v3109_v43  ;;  %v1091_v39 = vmax.f32 %v1008_v22, 0.0  ;;  %v1092_v40 = vmax.f32 %v1057_v35, 0.0 }
 0x21a   : > { %v739_v15 = vpop.f32.mrf.mxu2  ;;  %v788_v42 = vpop.f32.mrf.mxu3  ;;  %v817_v2 = vmax.f32 %v732_v52, 0.0  ;;  %v1126_v62 = vmax.f32 %v1124_v32, %v1092_v40 }
 0x21b   : > { %v740_v59 = vadd.f32 %v739_v15, %v3109_v43  ;;  %v789_v27 = vadd.f32 %v788_v42, %v3111_v45 }
 0x21c   : > { %v840_v19 = vmax.f32 %v3149_v11, %v817_v2 }
 0x21d   : > { %v1009_v46 = vpop.f32.mrf.mxu0  ;;  %v1058_v31 = vpop.f32.mrf.mxu1  ;;  %v823_v52 = vmax.f32 %v740_v59, 0.0 }
 0x21e   : > { %v1010_v30 = vadd.f32 %v1009_v46, %v3100_v37  ;;  %v1059_v11 = vadd.f32 %v1058_v31, %v3102_v38  ;;  %v1125_v46 = vmax.f32 %v1123_v8, %v1090_v58  ;;  %v824_v31 = vmax.f32 %v789_v27, 0.0 }
 0x21f   : > { %v843_v1 = vmax.f32 %v841_v34, %v823_v52 }
 0x220   : > { %v1093_v60 = vmax.f32 %v1010_v30, 0.0  ;;  %v1094_v17 = vmax.f32 %v1059_v11, 0.0  ;;  %v858_v2 = vmax.f32 %v856_v36, %v824_v31 }
 0x222   : > { %v3175_v47 = vpop.f32.mrf.mxu2  ;;  %v3177_v48 = vpop.f32.mrf.mxu3  ;;  %v1112_v7 = vmax.f32 %v1110_v54, %v1093_v60  ;;  %v1134_v54 = vld [vmem:[#allocation2 + $0x10] sm:$0xff] }
 0x223   : > { %v742_v26 = vadd.f32 %v3175_v47, %v3109_v43  ;;  %v791_v63 = vadd.f32 %v3177_v48, %v3111_v45  ;;  %v1127_v48 = vmax.f32 %v1125_v46, %v1094_v17 }
 0x225   : > { %v1012_v49 = vpop.f32.mrf.mxu0  ;;  %v1061_v50 = vpop.f32.mrf.mxu1  ;;  %v825_v8 = vmax.f32 %v742_v26, 0.0  ;;  %v826_v10 = vmax.f32 %v791_v63, 0.0 }
 0x226   : > { %v1013_v41 = vadd.f32 %v1012_v49, %v3100_v37  ;;  %v1062_v15 = vadd.f32 %v1061_v50, %v3102_v38 }
 0x227   : > { %1279 = vmatmul.bf16.gmra.mxu2 %v3076_v23  ;;  %1328 = vmatmul.bf16.gmra.mxu3 %v3076_v23 }
 0x228   : > { %1547 = vmatmul.bf16.gmra.mxu0 %v3076_v23  ;;  %1596 = vmatmul.bf16.gmra.mxu1 %v3076_v23  ;;  %v818_v23 = vmax.f32 %v781_v55, 0.0  ;;  %v842_v55 = vmax.f32 %v840_v19, %v821_v29  ;;  %v1095_v53 = vmax.f32 %v1013_v41, 0.0  ;;  %v1096_v0 = vmax.f32 %v1062_v15, 0.0 }
 0x22a   : > { %v3187_v56 = vpop.f32.mrf.mxu2  ;;  %v3189_v57 = vpop.f32.mrf.mxu3  ;;  %v855_v20 = vmax.f32 %v3151_v12, %v818_v23  ;;  %v1109_v12 = vmax.f32 %v3157_v16, %v1087_v14  ;;  %v1128_v24 = vmax.f32 %v1126_v62, %v1096_v0 }
 0x22c   : > { %v857_v16 = vmax.f32 %v855_v20, %v822_v6  ;;  %v1111_v61 = vmax.f32 %v1109_v12, %v1091_v39  ;;  %v844_v12 = vmax.f32 %v842_v55, %v825_v8 }
 0x22d   : > { %v1014_v3 = vpop.f32.mrf.mxu0  ;;  %v1063_v4 = vpop.f32.mrf.mxu1 }
 0x22e   : > { %v1015_v49 = vadd.f32 %v1014_v3, %v3100_v37  ;;  %v1064_v50 = vadd.f32 %v1063_v4, %v3102_v38  ;;  %v745_v3 = vadd.f32 %v3187_v56, %v3109_v43  ;;  %v794_v4 = vadd.f32 %v3189_v57, %v3111_v45 }
 0x22f   : > { %v1113_v18 = vmax.f32 %v1111_v61, %v1095_v53 }
 0x230   : > { %v1097_v13 = vmax.f32 %v1015_v49, 0.0  ;;  %v1098_v14 = vmax.f32 %v1064_v50, 0.0  ;;  %v827_v59 = vmax.f32 %v745_v3, 0.0  ;;  %v828_v57 = vmax.f32 %v794_v4, 0.0  ;;  %v1423_v4 = vld [vmem:[%s3408_s6 + $0x6] sm:$0x3] }
 0x232   : > { %v746_v9 = vpop.f32.mrf.mxu2  ;;  %v795_v21 = vpop.f32.mrf.mxu3  ;;  %v1114_v6 = vmax.f32 %v1112_v7, %v1097_v13  ;;  %v1129_v30 = vmax.f32 %v1127_v48, %v1098_v14  ;;  %v845_v31 = vmax.f32 %v843_v1, %v827_v59  ;;  %v860_v60 = vmax.f32 %v858_v2, %v828_v57  ;;  %v1155_v14 = vld [vmem:[%s3408_s6 + $0x4] sm:$0x3] }
 0x233   : > { %v747_v44 = vadd.f32 %v746_v9, %v3109_v43  ;;  %v796_v19 = vadd.f32 %v795_v21, %v3111_v45  ;;  %v859_v21 = vmax.f32 %v857_v16, %v826_v10  ;;  %v3242_v13 = vperm.slane %v1423_v4, 0 }
 0x235   : > { %v1017_v42 = vpop.f32.mrf.mxu0  ;;  %v1066_v51 = vpop.f32.mrf.mxu1  ;;  %v829_v32 = vmax.f32 %v747_v44, 0.0  ;;  %v830_v34 = vmax.f32 %v796_v19, 0.0 }
 0x236   : > { %v1018_v23 = vadd.f32 %v1017_v42, %v3100_v37  ;;  %v1067_v5 = vadd.f32 %v1066_v51, %v3102_v38  ;;  %v1133_v51 = vld [vmem:[#allocation2 + $0x18] sm:$0xff] }
 0x237   : > { %1284 = vmatmul.bf16.gmra.mxu2 %v3087_v28  ;;  %1333 = vmatmul.bf16.gmra.mxu3 %v3087_v28  ;;  %v846_v17 = vmax.f32 %v844_v12, %v829_v32  ;;  %v861_v26 = vmax.f32 %v859_v21, %v830_v34 }
 0x238   : > { %1552 = vmatmul.bf16.gmra.mxu0 %v3087_v28  ;;  %v1099_v35 = vmax.f32 %v1018_v23, 0.0  ;;  %v1100_v25 = vmax.f32 %v1067_v5, 0.0 }
 0x23a   : > { %v749_v47 = vpop.f32.mrf.mxu2  ;;  %v798_v33 = vpop.f32.mrf.mxu3  ;;  %v1115_v36 = vmax.f32 %v1113_v18, %v1099_v35  ;;  %v1130_v39 = vmax.f32 %v1128_v24, %v1100_v25 }
 0x23b   : > { %v750_v27 = vadd.f32 %v749_v47, %v3109_v43  ;;  %v799_v29 = vadd.f32 %v798_v33, %v3111_v45 }
 0x23d   : > { %v1019_v20 = vpop.f32.mrf.mxu0  ;;  %v1068_v22 = vpop.f32.mrf.mxu1  ;;  %v831_v15 = vmax.f32 %v750_v27, 0.0  ;;  %v832_v42 = vmax.f32 %v799_v29, 0.0 }
 0x23e   : > { %v1020_v58 = vadd.f32 %v1019_v20, %v3100_v37  ;;  %v1069_v56 = vadd.f32 %v1068_v22, %v3102_v38  ;;  %v3251_v20 = vperm.slane %v1155_v14, 0  ;;  %v3253_v22 = vperm.slane %v1155_v14, 1 }
 0x23f   : > { %v847_v0 = vmax.f32 %v845_v31, %v831_v15  ;;  %v862_v23 = vmax.f32 %v860_v60, %v832_v42 }
 0x240   : > { %v1101_v11 = vmax.f32 %v1020_v58, 0.0  ;;  %v1102_v9 = vmax.f32 %v1069_v56, 0.0 }
 0x242   : > { %v1116_v40 = vmax.f32 %v1114_v6, %v1101_v11  ;;  %v1131_v37 = vmax.f32 %v1129_v30, %v1102_v9  ;;  %v751_v41 = vpop.f32.mrf.mxu2  ;;  %v800_v38 = vpop.f32.mrf.mxu3 }
 0x243   : > { %v752_v46 = vadd.f32 %v751_v41, %v3109_v43  ;;  %v801_v52 = vadd.f32 %v800_v38, %v3111_v45  ;;  %v865_v43 = vld [vmem:[#allocation2 + $0x30] sm:$0xff]  ;;  %v866_v45 = vld [vmem:[#allocation2] sm:$0xff] }
 0x244   : > { %v1117_v55 = vmax.f32 %v1115_v36, %v1116_v40  ;;  %v1132_v16 = vmax.f32 %v1130_v39, %v1131_v37 }
 0x245   : > { %v833_v63 = vmax.f32 %v752_v46, 0.0  ;;  %v834_v49 = vmax.f32 %v801_v52, 0.0  ;;  %v1518_v50 = vpop.f32.mrf.mxu0  ;;  %v1567_v61 = vpop.f32.mrf.mxu1 }
 0x246   : > { %v1135_v62 = vmax.f32 %v1133_v51, %v1117_v55  ;;  %v1136_v53 = vmax.f32 %v1134_v54, %v1132_v16  ;;  %v1519_v44 = vadd.f32 %v1518_v50, %v3242_v13 }
 0x247   : > { %v848_v5 = vmax.f32 %v846_v17, %v833_v63  ;;  %v863_v47 = vmax.f32 %v861_v26, %v834_v49  ;;  %1601 = vmatmul.bf16.vlgmr.msrb.gmra.mxu3 %v3087_v28  ;;  %v3244_v28 = vperm.slane %v1423_v4, 1 }
 0x248   : > { %1137 = vst [vmem:[#allocation2 + $0x18] sm:$0xff] %v1135_v62  ;;  %v1607_v59 = vmax.f32 %v1519_v44, 0.0 }
 0x249   : > { %1138 = vst [vmem:[#allocation2 + $0x10] sm:$0xff] %v1136_v53  ;;  %v849_v1 = vmax.f32 %v847_v0, %v848_v5  ;;  %v864_v2 = vmax.f32 %v862_v23, %v863_v47  ;;  %v1568_v19 = vadd.f32 %v1567_v61, %v3244_v28 }
 0x24a   : > { %v1250_v33 = vpop.f32.mrf.mxu2  ;;  %v1299_v7 = vpop.f32.mrf.mxu3 }
 0x24b   : > { %v867_v48 = vmax.f32 %v865_v43, %v849_v1  ;;  %v868_v3 = vmax.f32 %v866_v45, %v864_v2  ;;  %v1608_v57 = vmax.f32 %v1568_v19, 0.0  ;;  %v1251_v6 = vadd.f32 %v1250_v33, %v3251_v20 }
 0x24c   : > { %v1300_v30 = vadd.f32 %v1299_v7, %v3253_v22 }
 0x24d   : > { %869 = vst [vmem:[#allocation2 + $0x30] sm:$0xff] %v867_v48  ;;  %v1520_v8 = vpop.f32.mrf.mxu0  ;;  %v1569_v10 = vpop.f32.mrf.mxu1  ;;  %v1339_v40 = vmax.f32 %v1251_v6, 0.0 }
 0x24e   : > { %870 = vst [vmem:[#allocation2] sm:$0xff] %v868_v3  ;;  %v1521_v36 = vadd.f32 %v1520_v8, %v3242_v13  ;;  %v1570_v39 = vadd.f32 %v1569_v10, %v3244_v28  ;;  %v1340_v37 = vmax.f32 %v1300_v30, 0.0 }
 0x250   : > { %v1609_v31 = vmax.f32 %v1521_v36, 0.0  ;;  %v1610_v60 = vmax.f32 %v1570_v39, 0.0 }
 0x252   : > { %v1252_v18 = vpop.f32.mrf.mxu2  ;;  %v1301_v24 = vpop.f32.mrf.mxu3 }
 0x253   : > { %v1253_v17 = vadd.f32 %v1252_v18, %v3251_v20  ;;  %v1302_v26 = vadd.f32 %v1301_v24, %v3253_v22 }
 0x255   : > { %v1523_v35 = vpop.f32.mrf.mxu0  ;;  %v1572_v25 = vpop.f32.mrf.mxu1  ;;  %v1341_v0 = vmax.f32 %v1253_v17, 0.0  ;;  %v1342_v23 = vmax.f32 %v1302_v26, 0.0 }
 0x256   : > { %v1524_v58 = vadd.f32 %v1523_v35, %v3242_v13  ;;  %v1573_v56 = vadd.f32 %v1572_v25, %v3244_v28 }
 0x258   : > { %v1611_v27 = vmax.f32 %v1524_v58, 0.0  ;;  %v1612_v29 = vmax.f32 %v1573_v56, 0.0 }
 0x25a   : > { %v1639_v11 = vmax.f32 %v1607_v59, %v1611_v27  ;;  %v1654_v9 = vmax.f32 %v1608_v57, %v1612_v29  ;;  %v1255_v12 = vpop.f32.mrf.mxu2  ;;  %v1304_v21 = vpop.f32.mrf.mxu3 }
 0x25b   : > { %v1256_v32 = vadd.f32 %v1255_v12, %v3251_v20  ;;  %v1305_v34 = vadd.f32 %v1304_v21, %v3253_v22 }
 0x25d   : > { %v1343_v41 = vmax.f32 %v1256_v32, 0.0  ;;  %v1344_v38 = vmax.f32 %v1305_v34, 0.0  ;;  %v1525_v15 = vpop.f32.mrf.mxu0  ;;  %v1574_v42 = vpop.f32.mrf.mxu1 }
 0x25e   : > { %v1526_v51 = vadd.f32 %v1525_v15, %v3242_v13  ;;  %v1575_v54 = vadd.f32 %v1574_v42, %v3244_v28 }
 0x25f   : > { %v1371_v46 = vmax.f32 %v1339_v40, %v1343_v41  ;;  %v1386_v52 = vmax.f32 %v1340_v37, %v1344_v38 }
 0x260   : > { %v1613_v55 = vmax.f32 %v1526_v51, 0.0  ;;  %v1614_v16 = vmax.f32 %v1575_v54, 0.0 }
 0x262   : > { %v1640_v63 = vmax.f32 %v1609_v31, %v1613_v55  ;;  %v3267_v49 = vmax.f32 %v1610_v60, %v1614_v16  ;;  %v1257_v50 = vpop.f32.mrf.mxu2  ;;  %v1306_v61 = vpop.f32.mrf.mxu3 }
 0x263   : > { %v1258_v62 = vadd.f32 %v1257_v50, %v3251_v20  ;;  %v1307_v53 = vadd.f32 %v1306_v61, %v3253_v22 }
 0x265   : > { %v1345_v5 = vmax.f32 %v1258_v62, 0.0  ;;  %v1346_v47 = vmax.f32 %v1307_v53, 0.0  ;;  %v1528_v43 = vpop.f32.mrf.mxu0  ;;  %v1577_v45 = vpop.f32.mrf.mxu1 }
 0x266   : > { %v1529_v1 = vadd.f32 %v1528_v43, %v3242_v13  ;;  %v1578_v2 = vadd.f32 %v1577_v45, %v3244_v28 }
 0x267   : > { %v1372_v33 = vmax.f32 %v1341_v0, %v1345_v5  ;;  %v1387_v7 = vmax.f32 %v1342_v23, %v1346_v47 }
 0x268   : > { %v1615_v48 = vmax.f32 %v1529_v1, 0.0  ;;  %v1616_v3 = vmax.f32 %v1578_v2, 0.0 }
 0x26a   : > { %v1641_v4 = vmax.f32 %v1639_v11, %v1615_v48  ;;  %v3273_v8 = vmax.f32 %v1654_v9, %v1616_v3  ;;  %v1260_v10 = vpop.f32.mrf.mxu2  ;;  %v1309_v14 = vpop.f32.mrf.mxu3 }
 0x26b   : > { %v1261_v18 = vadd.f32 %v1260_v10, %v3251_v20  ;;  %v1310_v24 = vadd.f32 %v1309_v14, %v3253_v22 }
 0x26d   : > { %v1347_v44 = vmax.f32 %v1261_v18, 0.0  ;;  %v1348_v19 = vmax.f32 %v1310_v24, 0.0  ;;  %v1530_v35 = vpop.f32.mrf.mxu0  ;;  %v3285_v39 = vpop.f32.mrf.mxu1 }
 0x26e   : > { %v1531_v25 = vadd.f32 %v1530_v35, %v3242_v13 }
 0x26f   : > { %v1373_v58 = vmax.f32 %v1371_v46, %v1347_v44  ;;  %v1388_v56 = vmax.f32 %v1386_v52, %v1348_v19 }
 0x270   : > { %v1617_v59 = vmax.f32 %v1531_v25, 0.0 }
 0x272   : > { %v3278_v57 = vmax.f32 %v1640_v63, %v1617_v59  ;;  %v1262_v27 = vpop.f32.mrf.mxu2  ;;  %v1311_v29 = vpop.f32.mrf.mxu3 }
 0x273   : > { %v1263_v6 = vadd.f32 %v1262_v27, %v3251_v20  ;;  %v1312_v30 = vadd.f32 %v1311_v29, %v3253_v22 }
 0x275   : > { %v1349_v11 = vmax.f32 %v1263_v6, 0.0  ;;  %v1350_v9 = vmax.f32 %v1312_v30, 0.0  ;;  %v1533_v12 = vpop.f32.mrf.mxu0  ;;  %v3289_v55 = vpop.f32.mrf.mxu1 }
 0x276   : > { %v1534_v21 = vadd.f32 %v1533_v12, %v3242_v13 }
 0x277   : > { %v1374_v32 = vmax.f32 %v1372_v33, %v1349_v11  ;;  %v3283_v34 = vmax.f32 %v1387_v7, %v1350_v9 }
 0x278   : > { %v1619_v36 = vmax.f32 %v1534_v21, 0.0 }
 0x27a   : > { %v1643_v40 = vmax.f32 %v1641_v4, %v1619_v36  ;;  %v1265_v37 = vpop.f32.mrf.mxu2  ;;  %v1314_v41 = vpop.f32.mrf.mxu3 }
 0x27b   : > { %v1266_v38 = vadd.f32 %v1265_v37, %v3251_v20  ;;  %v1315_v15 = vadd.f32 %v1314_v41, %v3253_v22 }
 0x27d   : > { %v1351_v42 = vmax.f32 %v1266_v38, 0.0  ;;  %v1352_v51 = vmax.f32 %v1315_v15, 0.0  ;;  %v1535_v54 = vpop.f32.mrf.mxu0  ;;  %v3291_v63 = vpop.f32.mrf.mxu1 }
 0x27e   : > { %v1536_v4 = vadd.f32 %v1535_v54, %v3242_v13 }
 0x27f   : > { %v1375_v46 = vmax.f32 %v1373_v58, %v1351_v42  ;;  %v1390_v52 = vmax.f32 %v1388_v56, %v1352_v51 }
 0x280   : > { %v1621_v19 = vmax.f32 %v1536_v4, 0.0 }
 0x282   : > { %v1267_v31 = vpop.f32.mrf.mxu2  ;;  %v1316_v60 = vpop.f32.mrf.mxu3  ;;  %v1644_v21 = vmax.f32 %v3278_v57, %v1621_v19 }
 0x283   : > { %v1268_v10 = vadd.f32 %v1267_v31, %v3251_v20  ;;  %v1317_v14 = vadd.f32 %v1316_v60, %v3253_v22 }
 0x285   : > { %v1538_v16 = vpop.f32.mrf.mxu0  ;;  %v3293_v0 = vpop.f32.mrf.mxu1  ;;  %v1353_v35 = vmax.f32 %v1268_v10, 0.0  ;;  %v1354_v29 = vmax.f32 %v1317_v14, 0.0 }
 0x286   : > { %v1539_v18 = vadd.f32 %v1538_v16, %v3242_v13 }
 0x287   : > { %v1376_v36 = vmax.f32 %v1374_v32, %v1353_v35  ;;  %v1391_v54 = vmax.f32 %v3283_v34, %v1354_v29 }
 0x288   : > { %v1623_v6 = vmax.f32 %v1539_v18, 0.0 }
 0x28a   : > { %v1270_v17 = vpop.f32.mrf.mxu2  ;;  %v1319_v26 = vpop.f32.mrf.mxu3  ;;  %v1645_v31 = vmax.f32 %v1643_v40, %v1623_v6 }
 0x28b   : > { %v1271_v24 = vadd.f32 %v1270_v17, %v3251_v20  ;;  %v1320_v44 = vadd.f32 %v1319_v26, %v3253_v22 }
 0x28d   : > { %v1540_v50 = vpop.f32.mrf.mxu0  ;;  %v3295_v43 = vpop.f32.mrf.mxu1  ;;  %v1355_v30 = vmax.f32 %v1271_v24, 0.0  ;;  %v1356_v11 = vmax.f32 %v1320_v44, 0.0 }
 0x28e   : > { %v1541_v25 = vadd.f32 %v1540_v50, %v3242_v13 }
 0x28f   : > { %v1377_v17 = vmax.f32 %v1375_v46, %v1355_v30  ;;  %v1392_v26 = vmax.f32 %v1390_v52, %v1356_v11 }
 0x290   : > { %v1625_v37 = vmax.f32 %v1541_v25, 0.0 }
 0x292   : > { %v1272_v61 = vpop.f32.mrf.mxu2  ;;  %v1321_v62 = vpop.f32.mrf.mxu3  ;;  %v1646_v50 = vmax.f32 %v1644_v21, %v1625_v37 }
 0x293   : > { %v1273_v59 = vadd.f32 %v1272_v61, %v3251_v20  ;;  %v1322_v15 = vadd.f32 %v1321_v62, %v3253_v22 }
 0x295   : > { %v1543_v53 = vpop.f32.mrf.mxu0  ;;  %v3297_v48 = vpop.f32.mrf.mxu1  ;;  %v1357_v38 = vmax.f32 %v1273_v59, 0.0  ;;  %v1358_v40 = vmax.f32 %v1322_v15, 0.0 }
 0x296   : > { %v1544_v27 = vadd.f32 %v1543_v53, %v3242_v13 }
 0x297   : > { %v1378_v34 = vmax.f32 %v1376_v36, %v1357_v38  ;;  %v1393_v25 = vmax.f32 %v1391_v54, %v1358_v40  ;;  %v1669_v54 = vld [vmem:[#allocation2 + $0x28] sm:$0xff] }
 0x298   : > { %v1627_v42 = vmax.f32 %v1544_v27, 0.0 }
 0x29a   : > { %v1275_v23 = vpop.f32.mrf.mxu2  ;;  %v1324_v5 = vpop.f32.mrf.mxu3  ;;  %v1647_v4 = vmax.f32 %v1645_v31, %v1627_v42 }
 0x29b   : > { %v1276_v60 = vadd.f32 %v1275_v23, %v3251_v20  ;;  %v1325_v57 = vadd.f32 %v1324_v5, %v3253_v22 }
 0x29d   : > { %v1545_v47 = vpop.f32.mrf.mxu0  ;;  %v3310_v41 = vpop.f32.mrf.mxu1  ;;  %v1359_v10 = vmax.f32 %v1276_v60, 0.0 }
 0x29e   : > { %v1546_v9 = vadd.f32 %v1545_v47, %v3242_v13 }
 0x2a0   : > { %v1629_v32 = vmax.f32 %v1546_v9, 0.0 }
 0x2a2   : > { %v1277_v45 = vpop.f32.mrf.mxu2  ;;  %v1326_v1 = vpop.f32.mrf.mxu3  ;;  %v1648_v14 = vmax.f32 %v1646_v50, %v1629_v32 }
 0x2a3   : > { %v1278_v61 = vadd.f32 %v1277_v45, %v3251_v20  ;;  %v1327_v62 = vadd.f32 %v1326_v1, %v3253_v22 }
 0x2a5   : > { %v1548_v2 = vpop.f32.mrf.mxu0  ;;  %v1361_v24 = vmax.f32 %v1278_v61, 0.0  ;;  %v1362_v44 = vmax.f32 %v1327_v62, 0.0 }
 0x2a6   : > { %v1549_v51 = vadd.f32 %v1548_v2, %v3242_v13 }
 0x2a7   : > { %v1380_v21 = vmax.f32 %v1378_v34, %v1361_v24  ;;  %v1395_v36 = vmax.f32 %v1393_v25, %v1362_v44 }
 0x2a8   : > { %v1631_v23 = vmax.f32 %v1549_v51, 0.0 }
 0x2aa   : > { %v1280_v33 = vpop.f32.mrf.mxu2  ;;  %v1329_v7 = vpop.f32.mrf.mxu3  ;;  %v1649_v59 = vmax.f32 %v1647_v4, %v1631_v23  ;;  %v1402_v23 = vld [vmem:[#allocation2 + $0x20] sm:$0xff] }
 0x2ab   : > { %v1281_v46 = vadd.f32 %v1280_v33, %v3251_v20  ;;  %v1330_v52 = vadd.f32 %v1329_v7, %v3253_v22  ;;  %v1597_v7 = vpop.f32.mrf.mxu1 }
 0x2ad   : > { %v1550_v3 = vpop.f32.mrf.mxu0  ;;  %v1363_v29 = vmax.f32 %v1281_v46, 0.0  ;;  %v1364_v6 = vmax.f32 %v1330_v52, 0.0  ;;  %v1590_v46 = vadd.f32 %v3295_v43, %v3244_v28  ;;  %v1598_v43 = vadd.f32 %v1597_v7, %v3244_v28 }
 0x2ae   : > { %v1551_v16 = vadd.f32 %v1550_v3, %v3242_v13  ;;  %v1360_v3 = vmax.f32 %v1325_v57, 0.0 }
 0x2b0   : > { %v1633_v5 = vmax.f32 %v1551_v16, 0.0  ;;  %v1394_v9 = vmax.f32 %v1392_v26, %v1360_v3  ;;  %v1580_v16 = vadd.f32 %v3285_v39, %v3244_v28  ;;  %v1401_v39 = vld [vmem:[#allocation2 + $0x8] sm:$0xff] }
 0x2b2   : > { %v1282_v58 = vpop.f32.mrf.mxu2  ;;  %v1331_v56 = vpop.f32.mrf.mxu3  ;;  %v1650_v30 = vmax.f32 %v1648_v14, %v1633_v5  ;;  %v1396_v26 = vmax.f32 %v1394_v9, %v1364_v6  ;;  %v1618_v4 = vmax.f32 %v1580_v16, 0.0  ;;  %v1632_v6 = vmax.f32 %v1598_v43, 0.0 }
 0x2b3   : > { %v1283_v45 = vadd.f32 %v1282_v58, %v3251_v20  ;;  %v1332_v1 = vadd.f32 %v1331_v56, %v3253_v22  ;;  %v1379_v58 = vmax.f32 %v1377_v17, %v1359_v10  ;;  %v1588_v10 = vadd.f32 %v3293_v0, %v3244_v28 }
 0x2b4   : > { %v1657_v44 = vmax.f32 %v3267_v49, %v1618_v4 }
 0x2b5   : > { %v1553_v12 = vpop.f32.mrf.mxu0  ;;  %v1365_v56 = vmax.f32 %v1283_v45, 0.0  ;;  %v1381_v17 = vmax.f32 %v1379_v58, %v1363_v29  ;;  %v1593_v45 = vadd.f32 %v3297_v48, %v3244_v28  ;;  %v1624_v0 = vmax.f32 %v1588_v10, 0.0 }
 0x2b6   : > { %v1554_v53 = vadd.f32 %v1553_v12, %v3242_v13  ;;  %v1366_v12 = vmax.f32 %v1332_v1, 0.0  ;;  %v1595_v1 = vadd.f32 %v3310_v41, %v3244_v28 }
 0x2b7   : > { %v1382_v32 = vmax.f32 %v1380_v21, %v1365_v56 }
 0x2b8   : > { %v1635_v19 = vmax.f32 %v1554_v53, 0.0  ;;  %v1397_v50 = vmax.f32 %v1395_v36, %v1366_v12  ;;  %v1583_v53 = vadd.f32 %v3289_v55, %v3244_v28  ;;  %v1630_v48 = vmax.f32 %v1595_v1, 0.0 }
 0x2ba   : > { %v1285_v47 = vpop.f32.mrf.mxu2  ;;  %v1334_v2 = vpop.f32.mrf.mxu3  ;;  %v1651_v37 = vmax.f32 %v1649_v59, %v1635_v19  ;;  %v1620_v5 = vmax.f32 %v1583_v53, 0.0  ;;  %v1626_v19 = vmax.f32 %v1590_v46, 0.0 }
 0x2bb   : > { %v1286_v27 = vadd.f32 %v1285_v47, %v3251_v20  ;;  %v1335_v33 = vadd.f32 %v1334_v2, %v3253_v22  ;;  %v1585_v47 = vadd.f32 %v3291_v63, %v3244_v28  ;;  %v1599_v63 = vpop.f32.mrf.mxu1 }
 0x2bc   : > { %v1658_v25 = vmax.f32 %v3273_v8, %v1620_v5 }
 0x2bd   : > { %v1555_v18 = vpop.f32.mrf.mxu0  ;;  %v1367_v42 = vmax.f32 %v1286_v27, 0.0  ;;  %v1368_v51 = vmax.f32 %v1335_v33, 0.0  ;;  %v1622_v3 = vmax.f32 %v1585_v47, 0.0  ;;  %v1628_v27 = vmax.f32 %v1593_v45, 0.0 }
 0x2be   : > { %v1556_v35 = vadd.f32 %v1555_v18, %v3242_v13  ;;  %v1660_v41 = vmax.f32 %v1658_v25, %v1624_v0 }
 0x2bf   : > { %v1398_v34 = vmax.f32 %v1396_v26, %v1368_v51  ;;  %v1659_v59 = vmax.f32 %v1657_v44, %v1622_v3 }
 0x2c0   : > { %v1637_v11 = vmax.f32 %v1556_v35, 0.0  ;;  %v1600_v35 = vadd.f32 %v1599_v63, %v3244_v28 }
 0x2c1   : > { %v1661_v29 = vmax.f32 %v1659_v59, %v1626_v19 }
 0x2c2   : > { %v1652_v38 = vmax.f32 %v1650_v30, %v1637_v11  ;;  %v1287_v13 = vpop.f32.mrf.mxu2  ;;  %v1336_v15 = vpop.f32.mrf.mxu3  ;;  %v1634_v30 = vmax.f32 %v1600_v35, 0.0  ;;  %v1662_v11 = vmax.f32 %v1660_v41, %v1628_v27 }
 0x2c3   : > { %v1288_v31 = vadd.f32 %v1287_v13, %v3251_v20  ;;  %v1337_v60 = vadd.f32 %v1336_v15, %v3253_v22  ;;  %v1383_v20 = vmax.f32 %v1381_v17, %v1367_v42  ;;  %v1663_v58 = vmax.f32 %v1661_v29, %v1630_v48 }
 0x2c4   : > { %v1653_v57 = vmax.f32 %v1651_v37, %v1652_v38  ;;  %v1664_v56 = vmax.f32 %v1662_v11, %v1632_v6  ;;  %v1670_v37 = vld [vmem:[#allocation2 + $0x38] sm:$0xff] }
 0x2c5   : > { %v1369_v61 = vmax.f32 %v1288_v31, 0.0  ;;  %v1370_v62 = vmax.f32 %v1337_v60, 0.0  ;;  %v1665_v12 = vmax.f32 %v1663_v58, %v1634_v30 }
 0x2c6   : > { %v1671_v2 = vmax.f32 %v1669_v54, %v1653_v57 }
 0x2c7   : > { %v1384_v22 = vmax.f32 %v1382_v32, %v1369_v61  ;;  %v1399_v40 = vmax.f32 %v1397_v50, %v1370_v62 }
 0x2c8   : > { %1673 = vst [vmem:[#allocation2 + $0x28] sm:$0xff] %v1671_v2 }
 0x2c9   : > { %v1385_v52 = vmax.f32 %v1383_v20, %v1384_v22  ;;  %v1400_v55 = vmax.f32 %v1398_v34, %v1399_v40 }
 0x2ca   : > { %v1602_v14 = vpop.f32.mrf.mxu3 }
 0x2cb   : > { %v1403_v18 = vmax.f32 %v1401_v39, %v1385_v52  ;;  %v1404_v24 = vmax.f32 %v1402_v23, %v1400_v55  ;;  %v1603_v33 = vadd.f32 %v1602_v14, %v3244_v28 }
 0x2cd   : > { %1405 = vst [vmem:[#allocation2 + $0x8] sm:$0xff] %v1403_v18  ;;  %v1636_v9 = vmax.f32 %v1603_v33, 0.0 }
 0x2ce   : > { %1406 = vst [vmem:[#allocation2 + $0x20] sm:$0xff] %v1404_v24 }
 0x2cf   : > { %v1666_v8 = vmax.f32 %v1664_v56, %v1636_v9 }
 0x2d2   : > { %v1604_v49 = vpop.f32.mrf.mxu3 }
 0x2d3   : > { %v1605_v7 = vadd.f32 %v1604_v49, %v3244_v28 }
 0x2d5   : > { %v1638_v21 = vmax.f32 %v1605_v7, 0.0 }
 0x2d7   : > { %v1667_v36 = vmax.f32 %v1665_v12, %v1638_v21 }
 0x2d9   : > { %v1668_v38 = vmax.f32 %v1666_v8, %v1667_v36  ;;  %1678 = sbr.rel (%p2166_p1) target bundleno = 759 (0x2f7), region = 56 }
 0x2db   : > { %v1672_v13 = vmax.f32 %v1670_v37, %v1668_v38 }
 0x2dd   : > { %1674 = vst [vmem:[#allocation2 + $0x38] sm:$0xff] %v1672_v13 }
 0x2de   : > { %v1679_v15 = vld [vmem:[#allocation2 + $0x30] sm:$0xff]  ;;  %v1680_v42 = vld [vmem:[#allocation2] sm:$0xff]  ;;  %v1681_v51 = vld [vmem:[#allocation2 + $0x18] sm:$0xff]  ;;  %vm1751_vm4 = vcmask 1042434   ;;  %vm1754_vm5 = vcmask 1044484   ;;  %vm1756_vm6 = vcmask 1046534  }
 0x2df   : > { %v1682_v54 = vld [vmem:[#allocation2 + $0x10] sm:$0xff]  ;;  %v1683_v31 = vld [vmem:[#allocation2 + $0x8] sm:$0xff]  ;;  %v1684_v60 = vld [vmem:[#allocation2 + $0x20] sm:$0xff]  ;;  %v1687_v16 = vrot.slane %v1679_v15, 4  ;;  %v1693_v28 = vrot.slane %v1680_v42, 4  ;;  %v1699_v17 = vrot.slane %v1681_v51, 4 }
 0x2e0   : > { %v1685_v26 = vld [vmem:[#allocation2 + $0x28] sm:$0xff]  ;;  %v1705_v32 = vrot.slane %v1682_v54, 4  ;;  %v1711_v50 = vrot.slane %v1683_v31, 4  ;;  %v1717_v61 = vrot.slane %v1684_v60, 4  ;;  %vm1758_vm7 = vcmask 1045508  }
 0x2e1   : > { %v1688_v62 = vmax.f32 %v1679_v15, %v1687_v16  ;;  %v1694_v53 = vmax.f32 %v1680_v42, %v1693_v28  ;;  %v1700_v47 = vmax.f32 %v1681_v51, %v1699_v17  ;;  %v1723_v2 = vrot.slane %v1685_v26, 4 }
 0x2e2   : > { %v1706_v20 = vmax.f32 %v1682_v54, %v1705_v32  ;;  %v1712_v34 = vmax.f32 %v1683_v31, %v1711_v50  ;;  %v1718_v22 = vmax.f32 %v1684_v60, %v1717_v61  ;;  %vm1760_vm8 = vcmask 1043456  }
 0x2e3   : > { %v1689_v4 = vrot.slane %v1688_v62, 2  ;;  %v1695_v39 = vrot.slane %v1694_v53, 2  ;;  %v1701_v23 = vrot.slane %v1700_v47, 2  ;;  %v1724_v10 = vmax.f32 %v1685_v26, %v1723_v2 }
 0x2e4   : > { %v1686_v57 = vld [vmem:[#allocation2 + $0x38] sm:$0xff]  ;;  %v1707_v46 = vrot.slane %v1706_v20, 2  ;;  %v1713_v52 = vrot.slane %v1712_v34, 2  ;;  %v1719_v55 = vrot.slane %v1718_v22, 2 }
 0x2e5   : > { %v1729_v40 = vrot.slane %v1686_v57, 4  ;;  %v1690_v3 = vmax.f32 %v1688_v62, %v1689_v4  ;;  %v1696_v63 = vmax.f32 %v1694_v53, %v1695_v39  ;;  %v1702_v14 = vmax.f32 %v1700_v47, %v1701_v23 }
 0x2e6   : > { %v1725_v45 = vrot.slane %v1724_v10, 2  ;;  %v1708_v1 = vmax.f32 %v1706_v20, %v1707_v46  ;;  %v1714_v18 = vmax.f32 %v1712_v34, %v1713_v52  ;;  %v1720_v24 = vmax.f32 %v1718_v22, %v1719_v55 }
 0x2e7   : > { %v1730_v5 = vmax.f32 %v1686_v57, %v1729_v40  ;;  %v1691_v0 = vrot.slane %v1690_v3, 1  ;;  %v1697_v19 = vrot.slane %v1696_v63, 1  ;;  %v1703_v43 = vrot.slane %v1702_v14, 1 }
 0x2e8   : > { %v1726_v35 = vmax.f32 %v1724_v10, %v1725_v45  ;;  %v1709_v25 = vrot.slane %v1708_v1, 1  ;;  %v1715_v59 = vrot.slane %v1714_v18, 1  ;;  %v1721_v27 = vrot.slane %v1720_v24, 1 }
 0x2e9   : > { %v1731_v44 = vrot.slane %v1730_v5, 2  ;;  %v1692_v33 = vmax.f32 %v1690_v3, %v1691_v0  ;;  %v1698_v41 = vmax.f32 %v1696_v63, %v1697_v19  ;;  %v1704_v29 = vmax.f32 %v1702_v14, %v1703_v43 }
 0x2ea   : > { %v1727_v6 = vrot.slane %v1726_v35, 1  ;;  %v1710_v30 = vmax.f32 %v1708_v1, %v1709_v25  ;;  %v1716_v49 = vmax.f32 %v1714_v18, %v1715_v59  ;;  %v1722_v11 = vmax.f32 %v1720_v24, %v1721_v27 }
 0x2eb   : > { %v1732_v48 = vmax.f32 %v1730_v5, %v1731_v44  ;;  %v1743_v7 = vrot.slane %v1698_v41, 7  ;;  %v1744_v56 = vrot.slane %v1704_v29, 6 }
 0x2ec   : > { %v1728_v9 = vmax.f32 %v1726_v35, %v1727_v6  ;;  %v1745_v21 = vrot.slane %v1710_v30, 5  ;;  %v1746_v8 = vrot.slane %v1716_v49, 4  ;;  %v1747_v36 = vrot.slane %v1722_v11, 3 }
 0x2ed   : > { %v1733_v58 = vrot.slane %v1732_v48, 1  ;;  %v1750_v38 = vsel %vm389_vm0, %v1692_v33, %v1743_v7 }
 0x2ee   : > { %v1748_v37 = vrot.slane %v1728_v9, 2  ;;  %v1752_v15 = vsel %vm1751_vm4, %v1744_v56, %v1745_v21  ;;  %v1755_v42 = vsel %vm1754_vm5, %v1746_v8, %v1747_v36 }
 0x2ef   : > { %v1734_v12 = vmax.f32 %v1732_v48, %v1733_v58  ;;  %v1753_v51 = vsel %vm390_vm1, %v1750_v38, %v1752_v15 }
 0x2f1   : > { %v1749_v13 = vrot.slane %v1734_v12, 1 }
 0x2f3   : > { %v1757_v54 = vsel %vm1756_vm6, %v1748_v37, %v1749_v13 }
 0x2f4   : > { %v1759_v31 = vsel %vm1758_vm7, %v1755_v42, %v1757_v54 }
 0x2f5   : > { %v1761_v60 = vsel %vm1760_vm8, %v1753_v51, %v1759_v31 }
 0x2f6   : > { %1763 = vst [vmem:[%s307_s18] sm:$0xff] %v1761_v60 }
 0x2f7 PF: > { %s2168_s27 = sshll.u32 %s2410_s28, 3  ;;  %s1777_s19 = sshll.u32 %s307_s18, 4  ;;  %s1778_s19 = int_to_ptr.vmem [resolvable:$true] %s1777_s19 }
 0x2f8   : > { %s1775_s12 = scalar_lea.hbm %s3409_s7, %s2168_s27  ;;  %s3420_s22 = sand.u32 1, %s2398_s25  }
 0x2f9   : > { %s1779_s21 = sshll.u32 %s1775_s12, 4  ;;  %s1765_s29 = scalar_lea.sflag [#allocation4], %s3420_s22  ;;  %s1780_s21 = int_to_ptr.hbm [resolvable:$true] %s1779_s21 }
 0x2fa   : > { %s2342_s23 = sshra.s32 %s1780_s21, 4  ;;  %s2348_s15 = scalar_lea.hbm %s3409_s7, 16  ;;  %s2343_s23 = int_to_ptr.hbm [resolvable:$true] %s2342_s23 }
 0x2fb   : > { %s2344_s9 = scalar_lea.hbm %s2343_s23, 8  ;;  %p2349_p6 = scmp.lt.s32.totalorder %s2343_s23, %s3409_s7 }
 0x2fc   : > { %p2345_p2 = scmp.ne.s32.totalorder %s2343_s23, %s2344_s9  ;;  %p2350_p7 = scmp.lt.s32.totalorder %s2348_s15, %s2344_s9 }
 0x2fe   : > { %p2346_p4 = pnand %p2345_p2, %p2515_p3  ;;  %p2351_p8 = por %p2350_p7, %p2349_p6 }
 0x300   : > { %p2347_p5 = pneg %p2346_p4 }
 0x302   : > { %p2352_p10 = pnand %p2351_p8, %p2347_p5 }
 0x304   : > { %2355 = shalt.err (!%p2352_p10)
}
 0x305   : > { %2253 = dma.vmem_to_hbm [thread:$0]  (%p2515_p3), %s1778_s19, 128, %s1780_s21, %s1765_s29  }
 0x306 PF: > { %p2259_p11 = scmp.ge.s32.totalorder %s2422_s8, 2  ;;  %s1791_s18 = sand.u32 1, %s2394_s24  }
 0x307   : > { %s1792_s20 = scalar_lea.sflag [#allocation4], %s1791_s18 }
 0x308   : > { %p2256_p12 = pnand %p2259_p11, %p2525_p9 }
 0x30a   : > { %p2257_p13 = pneg %p2256_p12 }
 0x30c   : > { %2389 = dma.done.wait (%p2257_p13), %s1792_s20, 128  }
 0x30d   : > { %2391 = vsyncadd (%p2257_p13), %s1792_s20, 4294967168  ;;  %s20_s8 = sadd.s32 1, %s2422_s8   ;;  %s3421_s27 = sld [smem:[#allocation6_spill]] }
 0x30e   : > { %p17_p0 = scmp.ge.s32.totalorder %s20_s8, 8   ;;  %s3422_s28 = sld [smem:[#allocation7_spill]] }
 0x30f   : > { %s3423_s29 = sld [smem:[#allocation8_spill]]  ;;  %s3425_s24 = smov %s2398_s25 }
 0x310   : > { %s3424_s30 = sld [smem:[#allocation9_spill]]  ;;  %s3426_s25 = smov %s2402_s26 }
 0x311   : > { %s3427_s26 = smov %s2533_s17  ;;  %19 = sbr.rel (!%p17_p0) target bundleno = 5 (0x5), region = 94 }
 0x316   :  { %1798 = vsyncpa [#allocation4], 1 }
 0x317   :  { %1800 = vsyncpa [#allocation4 + $0x1], 1 }

</bundles_post_ra>
